<compile_context>
chip_gen: v6e
topology: v6e:2x2x1
jax: 0.10.0
libtpu: 0.0.40
codegen_flags: <defaults>
</compile_context>

<pallas_src>
import jax
import jax.numpy as jnp
from jax.experimental import pallas as pl
from jax.experimental.pallas import tpu as pltpu


_GATHER_CHUNK = 2048  # rows of the point slab handled per one-hot gather matmul


def _gather_project_z(x_ref, xt_ref, idx_ref, w1_ref, wd_ref):
    """Recompute z = centre @ W1^T + gathered_neighbors @ (W2 - W1)^T for this row tile.

    x_ref:  (1, N, C)      full per-batch point slab (VMEM resident)
    xt_ref: (1, tn, C)     centre rows of this tile (second tiled view of x)
    idx_ref:(1, tn, K, 1)  neighbor indices (trailing 1 -> cheap lane broadcast in the compare)
    w1_ref: (C, O)         W1^T
    wd_ref: (C, O)         (W2 - W1)^T  (conv fold: (c-nb)@W1 + nb@W2 == c@W1 + nb@(W2-W1))
    returns (tn, K, O) float32
    """
    n_full, c = x_ref.shape[1], x_ref.shape[2]
    _, tn, k, _ = idx_ref.shape
    o = w1_ref.shape[1]

    # centre-point projection (tiny matmul)
    cproj = jnp.dot(xt_ref[0], w1_ref[...], preferred_element_type=jnp.float32)   # (tn, O)

    idx = idx_ref[0]                                                              # (tn, K, 1)

    # neighbor gather on the MXU via a one-hot matmul, chunked over N so the
    # (tn*K, chunk) operand (and its iota/compare temporaries) bound VMEM.
    # TODO(synk): for very large N a manual DMA row gather would beat the one-hot matmul.
    if n_full <= _GATHER_CHUNK or (n_full % _GATHER_CHUNK) != 0:
        iota = jax.lax.broadcasted_iota(jnp.int32, (tn, k, n_full), 2)
        onehot = (iota == idx).astype(jnp.float32).reshape(tn * k, n_full)
        nb = jnp.dot(onehot, x_ref[0], preferred_element_type=jnp.float32)        # (tn*K, C)
    else:
        steps = n_full // _GATHER_CHUNK

        def body(s, acc):
            base = pl.multiple_of(s * _GATHER_CHUNK, _GATHER_CHUNK)
            iota = jax.lax.broadcasted_iota(jnp.int32, (tn, k, _GATHER_CHUNK), 2) + base
            onehot = (iota == idx).astype(jnp.float32).reshape(tn * k, _GATHER_CHUNK)
            xs = x_ref[0, pl.ds(base, _GATHER_CHUNK), :]
            return acc + jnp.dot(onehot, xs, preferred_element_type=jnp.float32)

        nb = jax.lax.fori_loop(0, steps, body, jnp.zeros((tn * k, c), jnp.float32))

    nproj = jnp.dot(nb, wd_ref[...], preferred_element_type=jnp.float32)          # (tn*K, O)
    return nproj.reshape(tn, k, o) + cproj[:, None, :]                            # (tn, K, O)


def _stats_kernel(x_ref, xt_ref, idx_ref, w1_ref, wd_ref, zsum_ref, zsq_ref):
    # Pass 1: per-tile BatchNorm partial statistics only (z itself never hits HBM).
    z = _gather_project_z(x_ref, xt_ref, idx_ref, w1_ref, wd_ref)                 # (tn, K, O)
    tn, k, o = z.shape
    zflat = z.reshape(tn * k, o)
    zsum_ref[...] = jnp.sum(zflat, axis=0, keepdims=True).reshape(1, 1, 1, o)
    zsq_ref[...] = jnp.sum(zflat * zflat, axis=0, keepdims=True).reshape(1, 1, 1, o)


def _attn_kernel(x_ref, xt_ref, idx_ref, w1_ref, wd_ref, ss_ref, feat_ref, out_ref):
    # Pass 2: recompute z, BN affine + LeakyReLU + softmax over K + attention-weighted sum.
    # feat_ref: (1, O, tn*K) lane-dense slice of feature.reshape(B, O, N*K)
    # out_ref:  (1, O, tn)   written directly in (B, out_dim, N) layout
    z = _gather_project_z(x_ref, xt_ref, idx_ref, w1_ref, wd_ref)                 # (tn, K, O)
    tn, k, o = z.shape

    ss = ss_ref[...]                                                              # (2, O)
    scale = ss[0:1, :].reshape(1, 1, o)
    shift = ss[1:2, :].reshape(1, 1, o)

    e = z * scale + shift                        # BatchNorm2d (batch stats folded into affine)
    e = jnp.where(e >= 0, e, 0.2 * e)            # LeakyReLU(negative_slope=0.2)

    m = jnp.max(e, axis=1, keepdims=True)        # softmax over K (torch dim=2)
    p = jnp.exp(e - m)                           # (tn, K, O)
    inv_den = pl.reciprocal(jnp.sum(p, axis=1), approx=False)                      # (tn, O)

    # one in-kernel XLU transpose of the feature tile replaces the JAX-side full-tensor
    # (B, O, N, K) -> (B, N, K, O) permute (a full HBM read+write of the largest tensor).
    feat_t = feat_ref[0].T.reshape(tn, k, o)                                       # (tn, K, O)

    num = jnp.sum(p * feat_t, axis=1)                                              # (tn, O)
    out = num * inv_den
    out_ref[...] = out.T.reshape(1, o, tn)                                         # (1, O, tn)


def _vmem_plan():
    """Generation-aware (vmem_limit_bytes, tile_budget_bytes)."""
    mib = 1024 * 1024
    try:
        cap = int(pltpu.get_tpu_info().vmem_capacity_bytes)
    except Exception:  # conservative fallback: assume v7x-class 64 MiB
        cap = 64 * mib
    vmem_limit = max(32 * mib, min(cap - 12 * mib, 112 * mib))   # 52 MiB on v7x, 112 MiB on v5e/v6e
    budget = max(16 * mib, min(3 * cap // 8, 56 * mib))          # 24 MiB on v7x, 48 MiB on v5e/v6e
    return vmem_limit, budget


def _footprint_bytes(N, C, K, O, tn):
    """Approximate pass-2 VMEM working set for row tile tn (blocks + in-kernel temporaries)."""
    chunk = min(N, _GATHER_CHUNK)
    tk = tn * K
    opad = ((O + 7) // 8) * 8
    lane = lambda d: ((d + 127) // 128) * 128
    blocks = 2 * (                    # double-buffered pipeline blocks
        N * C                         # x slab
        + tn * C                      # centre row tile
        + tn * 8 * 128                # index block (K sublanes, trailing-1 lane-padded to 128)
        + 2 * C * O                   # w1, wd
        + opad * lane(tk)             # feature tile (O, tn*K)
        + opad * lane(tn)             # output tile (O, tn)
        + 2 * 128                     # scale/shift
    )
    scratch = (                       # in-kernel temporaries
        3 * tk * chunk                # iota + compare + one-hot
        + tk * C                      # gathered neighbor rows
        + 5 * tk * O                  # z / e / p / feat_t / product
        + 4 * tn * O                  # cproj / den / num / out
    )
    return (blocks + scratch) * 4


def _choose_tile_n(N, C, K, O, budget_bytes, B):
    """Largest legal row tile (tn == N, or a multiple of 128 dividing N) fitting the budget."""
    cands = [N] + sorted({t for t in range(128, N, 128) if N % t == 0}, reverse=True)
    fitting = [t for t in cands if _footprint_bytes(N, C, K, O, t) <= budget_bytes]
    if not fitting:
        # smallest legal tile; rely on vmem_limit headroom.
        # TODO(synk): for huge N also shrink _GATHER_CHUNK / switch to a manual DMA gather.
        return cands[-1]
    tn = fitting[0]
    # v7x megacore: with a tiny batch keep >=2 grid slices so both TensorCores get work.
    if B * (N // tn) < 2:
        smaller = [t for t in fitting if t < N]
        if smaller:
            tn = smaller[0]
    return tn


def graph_attention_forward(graph_index, x, feature, params):
    w, gamma, beta, eps = params["w"], params["gamma"], params["beta"], params["eps"]
    B, C, N = x.shape
    O = w.shape[0]
    K = graph_index.shape[-1]

    # --- JAX glue: free reshapes / weight prep only (no gathers, no permutes) ---
    x_pts = x.reshape(B, N, C).astype(jnp.float32)              # torch .view(B, N, C)
    gidx = graph_index.astype(jnp.int32).reshape(B, N, K, 1)    # trailing 1 -> cheap lane broadcast
    # TODO(synk): the (1,tn,K,1) index block is lane-padded 128x in VMEM; an SMEM / lane-dense
    # index path would reclaim it, but the padded form is what Mosaic lowers most robustly.
    w1t = jnp.transpose(w[:, :C]).astype(jnp.float32)           # (C, O)
    wdt = (jnp.transpose(w[:, C:]) - w1t).astype(jnp.float32)   # (C, O) == (W2 - W1)^T
    feat2d = feature.astype(jnp.float32).reshape(B, O, N * K)   # free reshape, NOT a permute

    vmem_limit, budget = _vmem_plan()
    tn = _choose_tile_n(N, C, K, O, budget, B)
    ng = N // tn
    grid = (B, ng)
    cparams = pltpu.CompilerParams(
        dimension_semantics=("parallel", "parallel"),
        vmem_limit_bytes=vmem_limit,
    )
    # TODO(synk): the (1,N,C) x slab could be single-buffered (pl.Buffered(1)) since its block
    # index is constant within a batch; left default-buffered for lowering robustness.
    x_slab_spec = pl.BlockSpec((1, N, C), lambda b, n: (b, 0, 0))
    x_tile_spec = pl.BlockSpec((1, tn, C), lambda b, n: (b, n, 0))
    idx_spec = pl.BlockSpec((1, tn, K, 1), lambda b, n: (b, n, 0, 0))
    w_spec = pl.BlockSpec((C, O), lambda b, n: (0, 0))

    # --- Pass 1 (Pallas): gather + folded conv, emit only BN partial stats (no z in HBM) ---
    zsum, zsq = pl.pallas_call(
        _stats_kernel,
        out_shape=(
            jax.ShapeDtypeStruct((B, ng, 1, O), jnp.float32),
            jax.ShapeDtypeStruct((B, ng, 1, O), jnp.float32),
        ),
        grid_spec=pltpu.PrefetchScalarGridSpec(
            num_scalar_prefetch=0,
            grid=grid,
            in_specs=[x_slab_spec, x_tile_spec, idx_spec, w_spec, w_spec],
            out_specs=(
                pl.BlockSpec((1, 1, 1, O), lambda b, n: (b, n, 0, 0)),
                pl.BlockSpec((1, 1, 1, O), lambda b, n: (b, n, 0, 0)),
            ),
        ),
        compiler_params=cparams,
    )(x_pts, x_pts, gidx, w1t, wdt)

    # --- BatchNorm2d training-mode batch stats (per-channel over B, N, K) ---
    count = B * N * K
    mean = jnp.sum(zsum, axis=(0, 1, 2)) / count
    var = jnp.sum(zsq, axis=(0, 1, 2)) / count - mean * mean     # biased, as in BN
    # TODO(synk): E[z^2]-E[z]^2 can cancel for |mean| >> std; use a centered/Welford
    # accumulation if activations are large.
    scale = gamma / jnp.sqrt(var + eps)
    shift = beta - mean * scale
    ss = jnp.stack([scale, shift], axis=0).astype(jnp.float32)   # (2, O)

    # --- Pass 2 (Pallas): recompute z + BN affine + LeakyReLU + softmax(K) + weighted sum ---
    out = pl.pallas_call(
        _attn_kernel,
        out_shape=jax.ShapeDtypeStruct((B, O, N), jnp.float32),
        grid_spec=pltpu.PrefetchScalarGridSpec(
            num_scalar_prefetch=0,
            grid=grid,
            in_specs=[
                x_slab_spec, x_tile_spec, idx_spec, w_spec, w_spec,
                pl.BlockSpec((2, O), lambda b, n: (0, 0)),
                pl.BlockSpec((1, O, tn * K), lambda b, n: (b, 0, n)),
            ],
            out_specs=pl.BlockSpec((1, O, tn), lambda b, n: (b, 0, n)),
        ),
        compiler_params=cparams,
    )(x_pts, x_pts, gidx, w1t, wdt, ss, feat2d)

    return out                                                   # (B, out_dim, N)


def _reference(graph_index, x, feature, params):
    # Pure-JAX reference mirroring the PyTorch module (training-mode BN).
    w, gamma, beta, eps = params["w"], params["gamma"], params["beta"], params["eps"]
    B, C, N = x.shape
    x_pts = x.reshape(B, N, C)
    nb = jax.vmap(lambda p, i: p[i])(x_pts, graph_index)
    centre = jnp.broadcast_to(x_pts[:, :, None, :], nb.shape)
    delta = jnp.concatenate([centre - nb, nb], axis=3)            # (B, N, K, 2C)
    z = jnp.einsum("bnkc,oc->bnko", delta, w)
    mean = jnp.mean(z, axis=(0, 1, 2))
    var = jnp.mean((z - mean) ** 2, axis=(0, 1, 2))
    e = gamma * (z - mean) / jnp.sqrt(var + eps) + beta
    e = jnp.where(e >= 0, e, 0.2 * e)
    att = jax.nn.softmax(e, axis=2)
    feat = jnp.transpose(feature, (0, 2, 3, 1))
    gf = jnp.sum(att * feat, axis=2)
    return jnp.transpose(gf, (0, 2, 1))


if __name__ == "__main__":
    B, C, N, K, O = 2, 16, 16, 8, 32   # feature_dim=C, out_dim=O
    key = jax.random.PRNGKey(0)
    kx, kf, ki, kw = jax.random.split(key, 4)

    x = jax.random.normal(kx, (B, C, N), dtype=jnp.float32)
    feature = jax.random.normal(kf, (B, O, N, K), dtype=jnp.float32)
    graph_index = jax.random.randint(ki, (B, N, K), 0, N, dtype=jnp.int32)

    params = {
        "w": 0.1 * jax.random.normal(kw, (O, 2 * C), dtype=jnp.float32),  # Conv2d(2C->O, 1x1, bias=False)
        "gamma": jnp.ones((O,), jnp.float32),                             # BatchNorm2d weight
        "beta": jnp.zeros((O,), jnp.float32),                             # BatchNorm2d bias
        "eps": 1e-5,
    }

    out = jax.jit(graph_attention_forward)(graph_index, x, feature, params)
    out = jax.block_until_ready(out)

    ref = _reference(graph_index, x, feature, params)
    assert out.shape == (B, O, N), out.shape
    assert jnp.allclose(out, ref, atol=1e-4, rtol=1e-4), float(jnp.max(jnp.abs(out - ref)))
    print("KERNEL_OK")
</pallas_src>

<mosaic_0001>
module attributes {stable_mosaic.version = 11 : i64} {
  func.func @_stats_kernel(%arg0: i32, %arg1: i32, %arg2: memref<1x16x16xf32, #tpu.memory_space<vmem>>, %arg3: memref<1x16x16xf32, #tpu.memory_space<vmem>>, %arg4: memref<1x16x8x1xi32, #tpu.memory_space<vmem>>, %arg5: memref<16x32xf32, #tpu.memory_space<vmem>>, %arg6: memref<16x32xf32, #tpu.memory_space<vmem>>, %arg7: memref<1x1x1x32xf32, #tpu.memory_space<vmem>>, %arg8: memref<1x1x1x32xf32, #tpu.memory_space<vmem>>) attributes {dimension_semantics = [#tpu.dimension_semantics<parallel>, #tpu.dimension_semantics<parallel>], iteration_bounds = array<i64: 2, 1>, scalar_prefetch = 0 : i64, scratch_operands = 0 : i64, tpu.core_type = #tpu.core_type<tc>, window_params = [{transform_indices = @transform_0, window_bounds = array<i64: 1, 16, 16>}, {transform_indices = @transform_1, window_bounds = array<i64: 1, 16, 16>}, {transform_indices = @transform_2, window_bounds = array<i64: 1, 16, 8, 1>}, {pipeline_mode = #tpu.pipeline_mode<synchronous>, transform_indices = @transform_3, window_bounds = array<i64: 16, 32>}, {pipeline_mode = #tpu.pipeline_mode<synchronous>, transform_indices = @transform_4, window_bounds = array<i64: 16, 32>}, {transform_indices = @transform_5, window_bounds = array<i64: 1, 1, 1, 32>}, {transform_indices = @transform_6, window_bounds = array<i64: 1, 1, 1, 32>}]} {
    %c0 = arith.constant 0 : index
    %c0_0 = arith.constant 0 : index
    %c0_1 = arith.constant 0 : index
    %0 = vector.load %arg3[%c0, %c0_0, %c0_1] : memref<1x16x16xf32, #tpu.memory_space<vmem>>, vector<1x16x16xf32>
    %1 = vector.shape_cast %0 : vector<1x16x16xf32> to vector<16x16xf32>
    %c0_2 = arith.constant 0 : index
    %c0_3 = arith.constant 0 : index
    %2 = vector.load %arg5[%c0_2, %c0_3] : memref<16x32xf32, #tpu.memory_space<vmem>>, vector<16x32xf32>
    %cst = arith.constant dense<0.000000e+00> : vector<16x32xf32>
    %3 = tpu.matmul %1, %2, %cst {dimension_numbers = #tpu.dot_dimension_numbers<[1], [0], [0], [1], [0, 0, 1, 1], [], []>} : vector<16x16xf32>, vector<16x32xf32>, vector<16x32xf32> -> vector<16x32xf32>
    %c0_4 = arith.constant 0 : index
    %c0_5 = arith.constant 0 : index
    %c0_6 = arith.constant 0 : index
    %c0_7 = arith.constant 0 : index
    %4 = vector.load %arg4[%c0_4, %c0_5, %c0_6, %c0_7] : memref<1x16x8x1xi32, #tpu.memory_space<vmem>>, vector<1x16x8x1xi32>
    %5 = vector.shape_cast %4 : vector<1x16x8x1xi32> to vector<16x8x1xi32>
    %6 = tpu.iota {dimensions = array<i32: 2>} : vector<16x8x16xi32>
    %7 = vector.broadcast %5 : vector<16x8x1xi32> to vector<16x8x16xi32>
    %8 = arith.cmpi eq, %6, %7 : vector<16x8x16xi32>
    %9 = arith.extui %8 : vector<16x8x16xi1> to vector<16x8x16xi32>
    %10 = arith.sitofp %9 : vector<16x8x16xi32> to vector<16x8x16xf32>
    %11 = vector.shape_cast %10 : vector<16x8x16xf32> to vector<128x16xf32>
    %c0_8 = arith.constant 0 : index
    %c0_9 = arith.constant 0 : index
    %c0_10 = arith.constant 0 : index
    %12 = vector.load %arg2[%c0_8, %c0_9, %c0_10] : memref<1x16x16xf32, #tpu.memory_space<vmem>>, vector<1x16x16xf32>
    %13 = vector.shape_cast %12 : vector<1x16x16xf32> to vector<16x16xf32>
    %cst_11 = arith.constant dense<0.000000e+00> : vector<128x16xf32>
    %14 = tpu.matmul %11, %13, %cst_11 {dimension_numbers = #tpu.dot_dimension_numbers<[1], [0], [0], [1], [0, 0, 1, 1], [], []>} : vector<128x16xf32>, vector<16x16xf32>, vector<128x16xf32> -> vector<128x16xf32>
    %c0_12 = arith.constant 0 : index
    %c0_13 = arith.constant 0 : index
    %15 = vector.load %arg6[%c0_12, %c0_13] : memref<16x32xf32, #tpu.memory_space<vmem>>, vector<16x32xf32>
    %cst_14 = arith.constant dense<0.000000e+00> : vector<128x32xf32>
    %16 = tpu.matmul %14, %15, %cst_14 {dimension_numbers = #tpu.dot_dimension_numbers<[1], [0], [0], [1], [0, 0, 1, 1], [], []>} : vector<128x16xf32>, vector<16x32xf32>, vector<128x32xf32> -> vector<128x32xf32>
    %17 = vector.shape_cast %16 : vector<128x32xf32> to vector<16x8x32xf32>
    %18 = vector.shape_cast %3 : vector<16x32xf32> to vector<16x1x32xf32>
    %19 = vector.broadcast %18 : vector<16x1x32xf32> to vector<16x8x32xf32>
    %20 = arith.addf %17, %19 : vector<16x8x32xf32>
    %21 = vector.shape_cast %20 : vector<16x8x32xf32> to vector<128x32xf32>
    %cst_15 = arith.constant dense<0.000000e+00> : vector<32xf32>
    %22 = vector.multi_reduction <add>, %21, %cst_15 [0] : vector<128x32xf32> to vector<32xf32>
    %23 = vector.shape_cast %22 : vector<32xf32> to vector<1x32xf32>
    %24 = vector.shape_cast %23 : vector<1x32xf32> to vector<1x1x1x32xf32>
    %c0_16 = arith.constant 0 : index
    %c0_17 = arith.constant 0 : index
    %c0_18 = arith.constant 0 : index
    %c0_19 = arith.constant 0 : index
    %25 = vector.load %arg7[%c0_16, %c0_17, %c0_18, %c0_19] : memref<1x1x1x32xf32, #tpu.memory_space<vmem>>, vector<1x1x1x32xf32>
    tpu.vector_store %arg7[%c0_16, %c0_17, %c0_18, %c0_19], %24 {strides = array<i32>} : memref<1x1x1x32xf32, #tpu.memory_space<vmem>>, vector<1x1x1x32xf32>,
    %26 = arith.mulf %21, %21 : vector<128x32xf32>
    %cst_20 = arith.constant dense<0.000000e+00> : vector<32xf32>
    %27 = vector.multi_reduction <add>, %26, %cst_20 [0] : vector<128x32xf32> to vector<32xf32>
    %28 = vector.shape_cast %27 : vector<32xf32> to vector<1x32xf32>
    %29 = vector.shape_cast %28 : vector<1x32xf32> to vector<1x1x1x32xf32>
    %c0_21 = arith.constant 0 : index
    %c0_22 = arith.constant 0 : index
    %c0_23 = arith.constant 0 : index
    %c0_24 = arith.constant 0 : index
    %30 = vector.load %arg8[%c0_21, %c0_22, %c0_23, %c0_24] : memref<1x1x1x32xf32, #tpu.memory_space<vmem>>, vector<1x1x1x32xf32>
    tpu.vector_store %arg8[%c0_21, %c0_22, %c0_23, %c0_24], %29 {strides = array<i32>} : memref<1x1x1x32xf32, #tpu.memory_space<vmem>>, vector<1x1x1x32xf32>,
    return
  }
  func.func @transform_0(%arg0: i32, %arg1: i32) -> (i32, i32, i32) {
    %c0_i32 = arith.constant 0 : i32
    %c0_i32_0 = arith.constant 0 : i32
    %c0_i32_1 = arith.constant 0 : i32
    return %arg0, %c0_i32, %c0_i32_0 : i32, i32, i32
  }
  func.func @transform_1(%arg0: i32, %arg1: i32) -> (i32, i32, i32) {
    %c0_i32 = arith.constant 0 : i32
    %c0_i32_0 = arith.constant 0 : i32
    return %arg0, %arg1, %c0_i32 : i32, i32, i32
  }
  func.func @transform_2(%arg0: i32, %arg1: i32) -> (i32, i32, i32, i32) {
    %c0_i32 = arith.constant 0 : i32
    %c0_i32_0 = arith.constant 0 : i32
    %c0_i32_1 = arith.constant 0 : i32
    return %arg0, %arg1, %c0_i32, %c0_i32_0 : i32, i32, i32, i32
  }
  func.func @transform_3(%arg0: i32, %arg1: i32) -> (i32, i32) {
    %c0_i32 = arith.constant 0 : i32
    %c0_i32_0 = arith.constant 0 : i32
    %c0_i32_1 = arith.constant 0 : i32
    return %c0_i32, %c0_i32_0 : i32, i32
  }
  func.func @transform_4(%arg0: i32, %arg1: i32) -> (i32, i32) {
    %c0_i32 = arith.constant 0 : i32
    %c0_i32_0 = arith.constant 0 : i32
    %c0_i32_1 = arith.constant 0 : i32
    return %c0_i32, %c0_i32_0 : i32, i32
  }
  func.func @transform_5(%arg0: i32, %arg1: i32) -> (i32, i32, i32, i32) {
    %c0_i32 = arith.constant 0 : i32
    %c0_i32_0 = arith.constant 0 : i32
    %c0_i32_1 = arith.constant 0 : i32
    return %arg0, %arg1, %c0_i32, %c0_i32_0 : i32, i32, i32, i32
  }
  func.func @transform_6(%arg0: i32, %arg1: i32) -> (i32, i32, i32, i32) {
    %c0_i32 = arith.constant 0 : i32
    %c0_i32_0 = arith.constant 0 : i32
    %c0_i32_1 = arith.constant 0 : i32
    return %arg0, %arg1, %c0_i32, %c0_i32_0 : i32, i32, i32, i32
  }
}

module attributes {stable_mosaic.version = 11 : i64} {
  func.func @_attn_kernel(%arg0: i32, %arg1: i32, %arg2: memref<1x16x16xf32, #tpu.memory_space<vmem>>, %arg3: memref<1x16x16xf32, #tpu.memory_space<vmem>>, %arg4: memref<1x16x8x1xi32, #tpu.memory_space<vmem>>, %arg5: memref<16x32xf32, #tpu.memory_space<vmem>>, %arg6: memref<16x32xf32, #tpu.memory_space<vmem>>, %arg7: memref<2x32xf32, #tpu.memory_space<vmem>>, %arg8: memref<1x32x128xf32, #tpu.memory_space<vmem>>, %arg9: memref<1x32x16xf32, #tpu.memory_space<vmem>>) attributes {dimension_semantics = [#tpu.dimension_semantics<parallel>, #tpu.dimension_semantics<parallel>], iteration_bounds = array<i64: 2, 1>, scalar_prefetch = 0 : i64, scratch_operands = 0 : i64, tpu.core_type = #tpu.core_type<tc>, window_params = [{transform_indices = @transform_0, window_bounds = array<i64: 1, 16, 16>}, {transform_indices = @transform_1, window_bounds = array<i64: 1, 16, 16>}, {transform_indices = @transform_2, window_bounds = array<i64: 1, 16, 8, 1>}, {pipeline_mode = #tpu.pipeline_mode<synchronous>, transform_indices = @transform_3, window_bounds = array<i64: 16, 32>}, {pipeline_mode = #tpu.pipeline_mode<synchronous>, transform_indices = @transform_4, window_bounds = array<i64: 16, 32>}, {pipeline_mode = #tpu.pipeline_mode<synchronous>, transform_indices = @transform_5, window_bounds = array<i64: 2, 32>}, {transform_indices = @transform_6, window_bounds = array<i64: 1, 32, 128>}, {transform_indices = @transform_7, window_bounds = array<i64: 1, 32, 16>}]} {
    %c0 = arith.constant 0 : index
    %c0_0 = arith.constant 0 : index
    %c0_1 = arith.constant 0 : index
    %0 = vector.load %arg3[%c0, %c0_0, %c0_1] : memref<1x16x16xf32, #tpu.memory_space<vmem>>, vector<1x16x16xf32>
    %1 = vector.shape_cast %0 : vector<1x16x16xf32> to vector<16x16xf32>
    %c0_2 = arith.constant 0 : index
    %c0_3 = arith.constant 0 : index
    %2 = vector.load %arg5[%c0_2, %c0_3] : memref<16x32xf32, #tpu.memory_space<vmem>>, vector<16x32xf32>
    %cst = arith.constant dense<0.000000e+00> : vector<16x32xf32>
    %3 = tpu.matmul %1, %2, %cst {dimension_numbers = #tpu.dot_dimension_numbers<[1], [0], [0], [1], [0, 0, 1, 1], [], []>} : vector<16x16xf32>, vector<16x32xf32>, vector<16x32xf32> -> vector<16x32xf32>
    %c0_4 = arith.constant 0 : index
    %c0_5 = arith.constant 0 : index
    %c0_6 = arith.constant 0 : index
    %c0_7 = arith.constant 0 : index
    %4 = vector.load %arg4[%c0_4, %c0_5, %c0_6, %c0_7] : memref<1x16x8x1xi32, #tpu.memory_space<vmem>>, vector<1x16x8x1xi32>
    %5 = vector.shape_cast %4 : vector<1x16x8x1xi32> to vector<16x8x1xi32>
    %6 = tpu.iota {dimensions = array<i32: 2>} : vector<16x8x16xi32>
    %7 = vector.broadcast %5 : vector<16x8x1xi32> to vector<16x8x16xi32>
    %8 = arith.cmpi eq, %6, %7 : vector<16x8x16xi32>
    %9 = arith.extui %8 : vector<16x8x16xi1> to vector<16x8x16xi32>
    %10 = arith.sitofp %9 : vector<16x8x16xi32> to vector<16x8x16xf32>
    %11 = vector.shape_cast %10 : vector<16x8x16xf32> to vector<128x16xf32>
    %c0_8 = arith.constant 0 : index
    %c0_9 = arith.constant 0 : index
    %c0_10 = arith.constant 0 : index
    %12 = vector.load %arg2[%c0_8, %c0_9, %c0_10] : memref<1x16x16xf32, #tpu.memory_space<vmem>>, vector<1x16x16xf32>
    %13 = vector.shape_cast %12 : vector<1x16x16xf32> to vector<16x16xf32>
    %cst_11 = arith.constant dense<0.000000e+00> : vector<128x16xf32>
    %14 = tpu.matmul %11, %13, %cst_11 {dimension_numbers = #tpu.dot_dimension_numbers<[1], [0], [0], [1], [0, 0, 1, 1], [], []>} : vector<128x16xf32>, vector<16x16xf32>, vector<128x16xf32> -> vector<128x16xf32>
    %c0_12 = arith.constant 0 : index
    %c0_13 = arith.constant 0 : index
    %15 = vector.load %arg6[%c0_12, %c0_13] : memref<16x32xf32, #tpu.memory_space<vmem>>, vector<16x32xf32>
    %cst_14 = arith.constant dense<0.000000e+00> : vector<128x32xf32>
    %16 = tpu.matmul %14, %15, %cst_14 {dimension_numbers = #tpu.dot_dimension_numbers<[1], [0], [0], [1], [0, 0, 1, 1], [], []>} : vector<128x16xf32>, vector<16x32xf32>, vector<128x32xf32> -> vector<128x32xf32>
    %17 = vector.shape_cast %16 : vector<128x32xf32> to vector<16x8x32xf32>
    %18 = vector.shape_cast %3 : vector<16x32xf32> to vector<16x1x32xf32>
    %19 = vector.broadcast %18 : vector<16x1x32xf32> to vector<16x8x32xf32>
    %20 = arith.addf %17, %19 : vector<16x8x32xf32>
    %c0_15 = arith.constant 0 : index
    %c0_16 = arith.constant 0 : index
    %21 = vector.load %arg7[%c0_15, %c0_16] : memref<2x32xf32, #tpu.memory_space<vmem>>, vector<2x32xf32>
    %22 = vector.extract_strided_slice %21 {offsets = [0, 0], sizes = [1, 32], strides = [1, 1]} : vector<2x32xf32> to vector<1x32xf32>
    %23 = vector.shape_cast %22 : vector<1x32xf32> to vector<1x1x32xf32>
    %24 = vector.extract_strided_slice %21 {offsets = [1, 0], sizes = [1, 32], strides = [1, 1]} : vector<2x32xf32> to vector<1x32xf32>
    %25 = vector.shape_cast %24 : vector<1x32xf32> to vector<1x1x32xf32>
    %26 = vector.broadcast %23 : vector<1x1x32xf32> to vector<16x8x32xf32>
    %27 = arith.mulf %20, %26 : vector<16x8x32xf32>
    %28 = vector.broadcast %25 : vector<1x1x32xf32> to vector<16x8x32xf32>
    %29 = arith.addf %27, %28 : vector<16x8x32xf32>
    %cst_17 = arith.constant 0.000000e+00 : f32
    %30 = vector.broadcast %cst_17 : f32 to vector<16x8x32xf32>
    %31 = arith.cmpf oge, %29, %30 : vector<16x8x32xf32>
    %cst_18 = arith.constant 2.000000e-01 : f32
    %32 = vector.broadcast %cst_18 : f32 to vector<16x8x32xf32>
    %33 = arith.mulf %32, %29 : vector<16x8x32xf32>
    %34 = arith.select %31, %29, %33 : vector<16x8x32xi1>, vector<16x8x32xf32>
    %cst_19 = arith.constant dense<0xFF800000> : vector<16x32xf32>
    %35 = vector.multi_reduction <maximumf>, %34, %cst_19 [1] : vector<16x8x32xf32> to vector<16x32xf32>
    %36 = vector.shape_cast %35 : vector<16x32xf32> to vector<16x1x32xf32>
    %37 = vector.broadcast %36 : vector<16x1x32xf32> to vector<16x8x32xf32>
    %38 = arith.subf %34, %37 : vector<16x8x32xf32>
    %39 = math.exp %38 : vector<16x8x32xf32>
    %cst_20 = arith.constant dense<0.000000e+00> : vector<16x32xf32>
    %40 = vector.multi_reduction <add>, %39, %cst_20 [1] : vector<16x8x32xf32> to vector<16x32xf32>
    %41 = tpu.reciprocal %40 : vector<16x32xf32> -> vector<16x32xf32>
    %c0_21 = arith.constant 0 : index
    %c0_22 = arith.constant 0 : index
    %c0_23 = arith.constant 0 : index
    %42 = vector.load %arg8[%c0_21, %c0_22, %c0_23] : memref<1x32x128xf32, #tpu.memory_space<vmem>>, vector<1x32x128xf32>
    %43 = vector.shape_cast %42 : vector<1x32x128xf32> to vector<32x128xf32>
    %44 = tpu.transpose %43, [1, 0] : vector<32x128xf32> -> vector<128x32xf32>
    %45 = vector.shape_cast %44 : vector<128x32xf32> to vector<16x8x32xf32>
    %46 = arith.mulf %39, %45 : vector<16x8x32xf32>
    %cst_24 = arith.constant dense<0.000000e+00> : vector<16x32xf32>
    %47 = vector.multi_reduction <add>, %46, %cst_24 [1] : vector<16x8x32xf32> to vector<16x32xf32>
    %48 = arith.mulf %47, %41 : vector<16x32xf32>
    %49 = tpu.transpose %48, [1, 0] : vector<16x32xf32> -> vector<32x16xf32>
    %50 = vector.shape_cast %49 : vector<32x16xf32> to vector<1x32x16xf32>
    %c0_25 = arith.constant 0 : index
    %c0_26 = arith.constant 0 : index
    %c0_27 = arith.constant 0 : index
    %51 = vector.load %arg9[%c0_25, %c0_26, %c0_27] : memref<1x32x16xf32, #tpu.memory_space<vmem>>, vector<1x32x16xf32>
    tpu.vector_store %arg9[%c0_25, %c0_26, %c0_27], %50 {strides = array<i32>} : memref<1x32x16xf32, #tpu.memory_space<vmem>>, vector<1x32x16xf32>,
    return
  }
  func.func @transform_0(%arg0: i32, %arg1: i32) -> (i32, i32, i32) {
    %c0_i32 = arith.constant 0 : i32
    %c0_i32_0 = arith.constant 0 : i32
    %c0_i32_1 = arith.constant 0 : i32
    return %arg0, %c0_i32, %c0_i32_0 : i32, i32, i32
  }
  func.func @transform_1(%arg0: i32, %arg1: i32) -> (i32, i32, i32) {
    %c0_i32 = arith.constant 0 : i32
    %c0_i32_0 = arith.constant 0 : i32
    return %arg0, %arg1, %c0_i32 : i32, i32, i32
  }
  func.func @transform_2(%arg0: i32, %arg1: i32) -> (i32, i32, i32, i32) {
    %c0_i32 = arith.constant 0 : i32
    %c0_i32_0 = arith.constant 0 : i32
    %c0_i32_1 = arith.constant 0 : i32
    return %arg0, %arg1, %c0_i32, %c0_i32_0 : i32, i32, i32, i32
  }
  func.func @transform_3(%arg0: i32, %arg1: i32) -> (i32, i32) {
    %c0_i32 = arith.constant 0 : i32
    %c0_i32_0 = arith.constant 0 : i32
    %c0_i32_1 = arith.constant 0 : i32
    return %c0_i32, %c0_i32_0 : i32, i32
  }
  func.func @transform_4(%arg0: i32, %arg1: i32) -> (i32, i32) {
    %c0_i32 = arith.constant 0 : i32
    %c0_i32_0 = arith.constant 0 : i32
    %c0_i32_1 = arith.constant 0 : i32
    return %c0_i32, %c0_i32_0 : i32, i32
  }
  func.func @transform_5(%arg0: i32, %arg1: i32) -> (i32, i32) {
    %c0_i32 = arith.constant 0 : i32
    %c0_i32_0 = arith.constant 0 : i32
    %c0_i32_1 = arith.constant 0 : i32
    return %c0_i32, %c0_i32_0 : i32, i32
  }
  func.func @transform_6(%arg0: i32, %arg1: i32) -> (i32, i32, i32) {
    %c0_i32 = arith.constant 0 : i32
    %c0_i32_0 = arith.constant 0 : i32
    return %arg0, %c0_i32, %arg1 : i32, i32, i32
  }
  func.func @transform_7(%arg0: i32, %arg1: i32) -> (i32, i32, i32) {
    %c0_i32 = arith.constant 0 : i32
    %c0_i32_0 = arith.constant 0 : i32
    return %arg0, %c0_i32, %arg1 : i32, i32, i32
  }
}

</mosaic_0001>

<bundles_post_ra>
// kernel: graph_attention_forward.2
= control target key start
LH: loop header
LB: loop body
LE: loop exit
PB: predicated region body
PF: predicated region fallthrough
CT: control target
= control target key end

     0   :  { %s1633_s21 = smov 0   ;;  %s1635_s22 = smov 0   ;;  %s1838_s0 = inlined_call_operand.vmem [shape: f32[2,16,16], index: 0, kind: input, shape index: {}, may-alias: {0,1}]   ;;  %s1839_s1 = inlined_call_operand.vmem [shape: f32[2,16,16], index: 1, kind: input, shape index: {}, may-alias: {0,1}]   ;;  %s1840_s2 = inlined_call_operand.vmem [shape: s32[2,16,8,1], index: 2, kind: input, shape index: {}]   ;;  %s1841_s3 = inlined_call_operand.vmem [shape: f32[16,32], index: 3, kind: input, shape index: {}]   ;;  %s1842_s4 = inlined_call_operand.vmem [shape: f32[16,32], index: 4, kind: input, shape index: {}]   ;;  %s1843_s5 = inlined_call_operand.vmem [shape: f32[2,1,1,32], index: 5, kind: output, shape index: {0}]   ;;  %s1844_s6 = inlined_call_operand.vmem [shape: f32[2,1,1,32], index: 6, kind: output, shape index: {1}]  }
   0x1   :  { %s1637_s23 = smov 0  }
   0x2 LB: > { %s29_s24 = sadd.s32 1, %s1589_s22  ;;  %p1377_p0 = scmp.ge.s32.totalorder %s1593_s23, 1  ;;  %s1593_s23 = sphi %s1637_s23, %s17_s23   ;;  %s1589_s22 = sphi %s1635_s22, %s1846_s22   ;;  %s1585_s21 = sphi %s1633_s21, %s1845_s21  }
   0x3   : > { %p31_p1 = scmp.ge.s32.totalorder %s29_s24, 2  ;;  %p265_p2 = scmp.lt.s32.totalorder %s1593_s23, 3 }
   0x5   : > { %s1848_s24 = smov (%p31_p1, %s29_s24), 0  ;;  %p266_p3 = pnand %p1377_p0, %p265_p2 }
   0x6   : > { %p320_p4 = scmp.lt.s32.totalorder (!%p266_p3), %s1585_s21, 1 }
   0x7   : > { %269 = sbr.rel (%p266_p3) target bundleno = 587 (0x24b), region = 40 }
   0xc   : > { %v1595_v0 = vmov 0   ;;  %s1850_s21 = smov (!%p320_p4, %s1585_s21), 1  ;;  %v360_v19 = vld [vmem:[%s1841_s3 + $0x8] sm:$0xff]  ;;  %v359_v20 = vld [vmem:[%s1841_s3] sm:$0xff]  ;;  %vm361_vm0 = vcmask 130048   ;;  %v459_v24 = vlaneseq  ;;  %v1596_v28 = vmov 0.0  }
   0xd   : > { %1570 = vset.pattern.permute.xlu1 %v1595_v0  ;;  %1569 = vset.pattern.permute.xlu0 %v1595_v0  ;;  %s1438_s25 = sshll.u32 %s1850_s21, 7  ;;  %s1436_s29 = sshll.u32 %s1850_s21, 4  ;;  %v753_v23 = vld [vmem:[%s1842_s4 + $0x8] sm:$0xff]  ;;  %v752_v59 = vld [vmem:[%s1842_s4] sm:$0xff] }
   0xe   : > { %s1657_s28 = scalar_lea.vmem %s1840_s2, %s1438_s25  ;;  %s324_s8 = scalar_lea.vmem %s1838_s0, %s1436_s29  ;;  %1479 = vmatprep.subr.mxu0 %v360_v19  ;;  %v1698_v25 = vand.u32 127, %v459_v24 }
   0xf   : > { %v445_v1 = vld [vmem:[%s1657_s28 + $0x10] sm:$0xff]  ;;  %v443_v2 = vld [vmem:[%s1657_s28] sm:$0xff]  ;;  %v446_v3 = vld [vmem:[%s1657_s28 + $0x18] sm:$0xff]  ;;  %s333_s15 = scalar_lea.vmem %s1839_s1, %s1436_s29  ;;  %1480 = vmatpush3.msra.mxu0 %v360_v19  ;;  %s350_s26 = scalar_lea.vmem %s1843_s5, %s1850_s21 }
  0x10   : > { %468 = vperm.xlu1 %1570, %v445_v1   ;;  %462 = vperm.xlu0 %1569, %v443_v2   ;;  %v444_v4 = vld [vmem:[%s1657_s28 + $0x8] sm:$0xff]  ;;  %v557_v6 = vld [vmem:[%s324_s8] sm:$0xff]  ;;  %v450_v9 = vld [vmem:[%s1657_s28 + $0x38] sm:$0xff]  ;;  %s356_s29 = scalar_lea.vmem %s1844_s6, %s1850_s21 }
  0x11   : > { %v558_v5 = vld [vmem:[%s324_s8 + $0x8] sm:$0xff]  ;;  %v447_v8 = vld [vmem:[%s1657_s28 + $0x20] sm:$0xff]  ;;  %v449_v10 = vld [vmem:[%s1657_s28 + $0x30] sm:$0xff]  ;;  %1481 = vmatprep.subr.mxu0 %v359_v20 }
  0x12   : > { %v448_v7 = vld [vmem:[%s1657_s28 + $0x28] sm:$0xff]  ;;  %1486 = vmatprep.subr.mxu1 %v558_v5  ;;  %v451_v12 = vld [vmem:[%s1657_s28 + $0x40] sm:$0xff]  ;;  %v454_v13 = vld [vmem:[%s1657_s28 + $0x58] sm:$0xff]  ;;  %1482 = vmatpush3.msra.mxu0 %v359_v20 }
  0x13   : > { %1487 = vmatpush3.msra.mxu1 %v558_v5  ;;  %v452_v11 = vld [vmem:[%s1657_s28 + $0x48] sm:$0xff]  ;;  %v453_v14 = vld [vmem:[%s1657_s28 + $0x50] sm:$0xff]  ;;  %v455_v16 = vld [vmem:[%s1657_s28 + $0x60] sm:$0xff]  ;;  %1514 = vmatprep.subr.mxu0 %v753_v23 }
  0x14   : > { %471 = vperm.xlu1 %1570, %v446_v3   ;;  %465 = vperm.xlu0 %1569, %v444_v4   ;;  %v456_v15 = vld [vmem:[%s1657_s28 + $0x68] sm:$0xff]  ;;  %v458_v17 = vld [vmem:[%s1657_s28 + $0x78] sm:$0xff]  ;;  %v457_v18 = vld [vmem:[%s1657_s28 + $0x70] sm:$0xff] }
  0x15   : > { %1488 = vmatprep.subr.mxu1 %v557_v6  ;;  %v357_v21 = vld [vmem:[%s333_s15] sm:$0xff]  ;;  %v358_v22 = vld [vmem:[%s333_s15 + $0x8] sm:$0xff] }
  0x16   : > { %1489 = vmatpush3.msra.mxu1 %v557_v6  ;;  %1483 = vmatprep.mubr.msk.f32.mxu0 %vm361_vm0, %v357_v21 }
  0x17   : > { %1484 = vmatmul.mubr.msk.f32.vlgmr.msra.gmra.mxu0 %vm361_vm0, %v358_v22 }
  0x18   : > { %477 = vperm.xlu1 %1570, %v448_v7   ;;  %474 = vperm.xlu0 %1569, %v447_v8  }
  0x19   : > { %1515 = vmatpush3.msra.mxu0 %v753_v23 }
  0x1a   : > { %1516 = vmatprep.subr.mxu0 %v752_v59 }
  0x1b   : > { %1517 = vmatpush3.msra.mxu0 %v752_v59 }
  0x1c   : > { %483 = vperm.xlu1 %1570, %v450_v9   ;;  %480 = vperm.xlu0 %1569, %v449_v10  }
  0x20   : > { %489 = vperm.xlu1 %1570, %v452_v11   ;;  %486 = vperm.xlu0 %1569, %v451_v12   ;;  %v1597_v12 = vmov 1966171168  }
  0x24   : > { %495 = vperm.xlu1 %1570, %v454_v13   ;;  %492 = vperm.xlu0 %1569, %v453_v14   ;;  %v951_v13 = vunpack.c.l.s4 %v1597_v12 }
  0x26   : > { %v952_v14 = vunpack.c.0.s8 %v951_v13 }
  0x28   : > { %501 = vperm.xlu1 %1570, %v456_v15   ;;  %498 = vperm.xlu0 %1569, %v455_v16   ;;  %v954_v15 = vshrl.u32 %v459_v24, 7 }
  0x2a   : > { %v1755_v22 = vsub.s32 0, %v954_v15 }
  0x2c   : > { %507 = vperm.xlu1 %1570, %v458_v17   ;;  %504 = vperm.xlu0 %1569, %v457_v18   ;;  %v1752_v17 = vsub.s32 %v952_v14, %v954_v15 }
  0x8b   : > { %v469_v26 = vpop.permute.xlu1 %468  ;;  %v463_v27 = vpop.permute.xlu0 %462 }
  0x8c   : > { %vm509_vm1 = vcmp.eq.s32.totalorder %v1698_v25, %v463_v27  ;;  %vm511_vm2 = vcmp.eq.s32.totalorder %v1698_v25, %v469_v26 }
  0x8d   : > { %v1386_v29 = vsel %vm509_vm1, 1.0, %v1596_v28  ;;  %v1388_v32 = vsel %vm511_vm2, 1.0, %v1596_v28  ;;  %vm1181_vm2 = vcmask 253952  }
  0x8e   : > { %1490 = vmatprep.mubr.msk.f32.mxu1 %vm361_vm0, %v1386_v29 }
  0x8f   : > { %v472_v30 = vpop.permute.xlu1 %471  ;;  %v466_v31 = vpop.permute.xlu0 %465 }
  0x90   : > { %vm510_vm3 = vcmp.eq.s32.totalorder %v1698_v25, %v466_v31  ;;  %vm512_vm4 = vcmp.eq.s32.totalorder %v1698_v25, %v472_v30 }
  0x91   : > { %v1387_v33 = vsel %vm510_vm3, 1.0, %v1596_v28  ;;  %v1389_v36 = vsel %vm512_vm4, 1.0, %v1596_v28 }
  0x92   : > { %1491 = vmatmul.mubr.msk.f32.vlgmr.msra.gmra.mxu1 %vm361_vm0, %v1387_v33 }
  0x93   : > { %v478_v34 = vpop.permute.xlu1 %477  ;;  %v475_v35 = vpop.permute.xlu0 %474  ;;  %1493 = vmatprep.mubr.msk.f32.mxu1 %vm361_vm0, %v1388_v32 }
  0x94   : > { %vm513_vm5 = vcmp.eq.s32.totalorder %v1698_v25, %v475_v35  ;;  %vm514_vm6 = vcmp.eq.s32.totalorder %v1698_v25, %v478_v34 }
  0x95   : > { %v1390_v37 = vsel %vm513_vm5, 1.0, %v1596_v28  ;;  %v1391_v40 = vsel %vm514_vm6, 1.0, %v1596_v28 }
  0x96   : > { %1494 = vmatmul.mubr.msk.f32.gmra.mxu1 %vm361_vm0, %v1389_v36 }
  0x97   : > { %v484_v38 = vpop.permute.xlu1 %483  ;;  %v481_v39 = vpop.permute.xlu0 %480  ;;  %1496 = vmatprep.mubr.msk.f32.mxu1 %vm361_vm0, %v1390_v37 }
  0x98   : > { %vm515_vm7 = vcmp.eq.s32.totalorder %v1698_v25, %v481_v39  ;;  %vm516_vm8 = vcmp.eq.s32.totalorder %v1698_v25, %v484_v38 }
  0x99   : > { %v1392_v41 = vsel %vm515_vm7, 1.0, %v1596_v28  ;;  %v1393_v44 = vsel %vm516_vm8, 1.0, %v1596_v28 }
  0x9a   : > { %1497 = vmatmul.mubr.msk.f32.gmra.mxu1 %vm361_vm0, %v1391_v40 }
  0x9b   : > { %v490_v42 = vpop.permute.xlu1 %489  ;;  %v487_v43 = vpop.permute.xlu0 %486  ;;  %1499 = vmatprep.mubr.msk.f32.mxu1 %vm361_vm0, %v1392_v41 }
  0x9c   : > { %vm517_vm9 = vcmp.eq.s32.totalorder %v1698_v25, %v487_v43  ;;  %vm518_vm10 = vcmp.eq.s32.totalorder %v1698_v25, %v490_v42 }
  0x9d   : > { %v1394_v45 = vsel %vm517_vm9, 1.0, %v1596_v28  ;;  %v1395_v48 = vsel %vm518_vm10, 1.0, %v1596_v28 }
  0x9e   : > { %1500 = vmatmul.mubr.msk.f32.gmra.mxu1 %vm361_vm0, %v1393_v44 }
  0x9f   : > { %v496_v46 = vpop.permute.xlu1 %495  ;;  %v493_v47 = vpop.permute.xlu0 %492  ;;  %1502 = vmatprep.mubr.msk.f32.mxu1 %vm361_vm0, %v1394_v45 }
  0xa0   : > { %vm519_vm11 = vcmp.eq.s32.totalorder %v1698_v25, %v493_v47  ;;  %vm520_vm12 = vcmp.eq.s32.totalorder %v1698_v25, %v496_v46 }
  0xa1   : > { %v1396_v49 = vsel %vm519_vm11, 1.0, %v1596_v28  ;;  %v1397_v52 = vsel %vm520_vm12, 1.0, %v1596_v28 }
  0xa2   : > { %1503 = vmatmul.mubr.msk.f32.gmra.mxu1 %vm361_vm0, %v1395_v48 }
  0xa3   : > { %v502_v50 = vpop.permute.xlu1 %501  ;;  %v499_v51 = vpop.permute.xlu0 %498  ;;  %1505 = vmatprep.mubr.msk.f32.mxu1 %vm361_vm0, %v1396_v49 }
  0xa4   : > { %vm521_vm13 = vcmp.eq.s32.totalorder %v1698_v25, %v499_v51  ;;  %vm522_vm14 = vcmp.eq.s32.totalorder %v1698_v25, %v502_v50 }
  0xa5   : > { %v1398_v53 = vsel %vm521_vm13, 1.0, %v1596_v28  ;;  %v1399_v56 = vsel %vm522_vm14, 1.0, %v1596_v28 }
  0xa6   : > { %1506 = vmatmul.mubr.msk.f32.gmra.mxu1 %vm361_vm0, %v1397_v52 }
  0xa7   : > { %v508_v54 = vpop.permute.xlu1 %507  ;;  %v505_v55 = vpop.permute.xlu0 %504  ;;  %1508 = vmatprep.mubr.msk.f32.mxu1 %vm361_vm0, %v1398_v53 }
  0xa8   : > { %vm523_vm15 = vcmp.eq.s32.totalorder %v1698_v25, %v505_v55  ;;  %vm524_vm1 = vcmp.eq.s32.totalorder %v1698_v25, %v508_v54 }
  0xa9   : > { %v1400_v57 = vsel %vm523_vm15, 1.0, %v1596_v28  ;;  %v1401_v58 = vsel %vm524_vm1, 1.0, %v1596_v28 }
  0xaa   : > { %1509 = vmatmul.mubr.msk.f32.gmra.mxu1 %vm361_vm0, %v1399_v56 }
  0xab   : > { %1511 = vmatprep.mubr.msk.f32.mxu1 %vm361_vm0, %v1400_v57 }
  0xae   : > { %1512 = vmatmul.mubr.msk.f32.gmra.mxu1 %vm361_vm0, %v1401_v58 }
  0xd7   : > { %v1485_v16 = vpop.f32.mrf.mxu0 }
  0xd8   : > { %v998_v24 = vcombine.high %v1485_v16, %v1485_v16  ;;  %v1005_v35 = vrot.slane %v1485_v16, %v1752_v17 }
  0xd9   : > { %v434_v18 = vpop.f32.mrf.mxu0 }
  0xda   : > { %v956_v19 = vrot.slane %v434_v18, %v1752_v17  ;;  %v949_v21 = vcombine.high %v434_v18, %v434_v18  ;;  %v1765_v36 = vrot.slane %v998_v24, %v1752_v17  ;;  %v1013_v47 = vcombine.high %v1005_v35, %v1005_v35 }
  0xdc   : > { %v964_v20 = vcombine.high %v956_v19, %v956_v19  ;;  %v963_v25 = vrot.slane %v949_v21, %v1752_v17  ;;  %v972_v26 = vrot.slane %v956_v19, %v1752_v17  ;;  %v1014_v48 = vcombine.high %v1765_v36, %v1765_v36 }
  0xde   : > { %v986_v23 = vrot.slane %v964_v20, %v1752_v17  ;;  %v965_v29 = vcombine.high %v963_v25, %v963_v25  ;;  %v994_v31 = vcombine.high %v972_v26, %v972_v26  ;;  %v1050_v33 = vrot.slane %v972_v26, %v1755_v22 }
  0xdf   : > { %v979_v42 = vrot.slane %v963_v25, %v1752_v17 }
  0xe0   : > { %v1054_v27 = vrot.slane %v986_v23, %v1755_v22  ;;  %v996_v28 = vcombine.high %v986_v23, %v986_v23  ;;  %v993_v38 = vrot.slane %v965_v29, %v1752_v17  ;;  %v1058_v41 = vrot.slane %v994_v31, %v1755_v22 }
  0xe1   : > { %v1066_v58 = vrot.slane %v979_v42, %v1755_v22  ;;  %v995_v59 = vcombine.high %v979_v42, %v979_v42  ;;  %v1042_v42 = vrot.slane %v1014_v48, %v1752_v17 }
  0xe2   : > { %v1062_v34 = vrot.slane %v996_v28, %v1755_v22  ;;  %v1070_v50 = vrot.slane %v993_v38, %v1755_v22  ;;  %v997_v54 = vcombine.high %v993_v38, %v993_v38 }
  0xe3   : > { %v1074_v13 = vrot.slane %v995_v59, %v1755_v22 }
 0x152   : > { %v1492_v60 = vpop.f32.mrf.mxu1 }
 0x154   : > { %v673_v61 = vpop.f32.mrf.mxu1 }
 0x155   : > { %1518 = vmatprep.mubr.msk.f32.mxu0 %vm361_vm0, %v673_v61 }
 0x156   : > { %v1495_v62 = vpop.f32.mrf.mxu1  ;;  %1519 = vmatmul.mubr.msk.f32.vlgmr.msra.gmra.mxu0 %vm361_vm0, %v1492_v60 }
 0x158   : > { %v683_v63 = vpop.f32.mrf.mxu1 }
 0x159   : > { %1521 = vmatprep.mubr.msk.f32.mxu0 %vm361_vm0, %v683_v63 }
 0x15a   : > { %v1498_v0 = vpop.f32.mrf.mxu1  ;;  %1522 = vmatmul.mubr.msk.f32.gmra.mxu0 %vm361_vm0, %v1495_v62 }
 0x15c   : > { %v693_v1 = vpop.f32.mrf.mxu1 }
 0x15d   : > { %1524 = vmatprep.mubr.msk.f32.mxu0 %vm361_vm0, %v693_v1 }
 0x15e   : > { %v1501_v2 = vpop.f32.mrf.mxu1  ;;  %1525 = vmatmul.mubr.msk.f32.gmra.mxu0 %vm361_vm0, %v1498_v0  ;;  %v1021_v0 = vrot.slane %v1005_v35, %v1752_v17 }
 0x160   : > { %v703_v3 = vpop.f32.mrf.mxu1  ;;  %v1082_v25 = vrot.slane %v1021_v0, %v1755_v22 }
 0x161   : > { %1527 = vmatprep.mubr.msk.f32.mxu0 %vm361_vm0, %v703_v3 }
 0x162   : > { %v1504_v4 = vpop.f32.mrf.mxu1  ;;  %1528 = vmatmul.mubr.msk.f32.gmra.mxu0 %vm361_vm0, %v1501_v2 }
 0x164   : > { %v713_v5 = vpop.f32.mrf.mxu1 }
 0x165   : > { %1530 = vmatprep.mubr.msk.f32.mxu0 %vm361_vm0, %v713_v5 }
 0x166   : > { %v1507_v6 = vpop.f32.mrf.mxu1  ;;  %1531 = vmatmul.mubr.msk.f32.gmra.mxu0 %vm361_vm0, %v1504_v4  ;;  %v1035_v4 = vrot.slane %v1013_v47, %v1752_v17 }
 0x168   : > { %v723_v7 = vpop.f32.mrf.mxu1  ;;  %v1086_v23 = vrot.slane %v1035_v4, %v1755_v22  ;;  %v1045_v24 = vcombine.high %v1035_v4, %v1035_v4 }
 0x169   : > { %1533 = vmatprep.mubr.msk.f32.mxu0 %vm361_vm0, %v723_v7 }
 0x16a   : > { %v1510_v8 = vpop.f32.mrf.mxu1  ;;  %1534 = vmatmul.mubr.msk.f32.gmra.mxu0 %vm361_vm0, %v1507_v6  ;;  %v1094_v47 = vrot.slane %v1045_v24, %v1755_v22 }
 0x16c   : > { %v733_v9 = vpop.f32.mrf.mxu1 }
 0x16d   : > { %1536 = vmatprep.mubr.msk.f32.mxu0 %vm361_vm0, %v733_v9 }
 0x16e   : > { %v1513_v10 = vpop.f32.mrf.mxu1  ;;  %1537 = vmatmul.mubr.msk.f32.gmra.mxu0 %vm361_vm0, %v1510_v8  ;;  %v1078_v8 = vrot.slane %v997_v54, %v1755_v22 }
 0x170   : > { %v743_v11 = vpop.f32.mrf.mxu1 }
 0x171   : > { %1539 = vmatprep.mubr.msk.f32.mxu0 %vm361_vm0, %v743_v11 }
 0x172   : > { %1540 = vmatmul.mubr.msk.f32.gmra.mxu0 %vm361_vm0, %v1513_v10  ;;  %vm1143_vm0 = vcmask 261120  }
 0x216   : > { %v1520_v30 = vpop.f32.mrf.mxu0 }
 0x217   : > { %v1128_v32 = vadd.f32 %v1520_v30, %v1054_v27 }
 0x218   : > { %v868_v37 = vpop.f32.mrf.mxu0 }
 0x219   : > { %v1127_v39 = vadd.f32 %v1050_v33, %v868_v37  ;;  %v1184_v43 = vmul.f32 %v1128_v32, %v1128_v32  ;;  %v1145_v51 = vsel %vm1143_vm0, %v1128_v32, 0.0  ;;  %v1043_v33 = vcombine.high %v1021_v0, %v1021_v0 }
 0x21a   : > { %v1523_v40 = vpop.f32.mrf.mxu0 }
 0x21b   : > { %v1144_v44 = vsel %vm1143_vm0, %v1127_v39, 0.0  ;;  %v1183_v45 = vmul.f32 %v1127_v39, %v1127_v39  ;;  %v1130_v46 = vadd.f32 %v1523_v40, %v1062_v34  ;;  %v1200_v60 = vsel %vm1143_vm0, %v1184_v43, 0.0 }
 0x21c   : > { %v878_v49 = vpop.f32.mrf.mxu0  ;;  %v1146_v55 = vadd.f32 %v1145_v51, %v1144_v44  ;;  %v1028_v43 = vrot.slane %v1765_v36, %v1752_v17 }
 0x21d   : > { %v1199_v52 = vsel %vm1143_vm0, %v1183_v45, 0.0  ;;  %v1129_v53 = vadd.f32 %v1058_v41, %v878_v49  ;;  %v1186_v56 = vmul.f32 %v1130_v46, %v1130_v46  ;;  %v1149_v5 = vsel %vm1143_vm0, %v1130_v46, 0.0 }
 0x21e   : > { %v1526_v57 = vpop.f32.mrf.mxu0  ;;  %v1201_v1 = vadd.f32 %v1200_v60, %v1199_v52  ;;  %v1098_v59 = vrot.slane %v1028_v43, %v1755_v22  ;;  %v1044_v4 = vcombine.high %v1028_v43, %v1028_v43 }
 0x21f   : > { %v1147_v61 = vsel %vm1143_vm0, %v1129_v53, 0.0  ;;  %v1185_v62 = vmul.f32 %v1129_v53, %v1129_v53  ;;  %v1132_v63 = vadd.f32 %v1526_v57, %v1070_v50  ;;  %v1204_v9 = vsel %vm1143_vm0, %v1186_v56, 0.0 }
 0x220   : > { %v1148_v2 = vadd.f32 %v1147_v61, %v1146_v55  ;;  %v888_v3 = vpop.f32.mrf.mxu0  ;;  %v1090_v53 = vrot.slane %v1043_v33, %v1755_v22 }
 0x221   : > { %v1202_v6 = vsel %vm1143_vm0, %v1185_v62, 0.0  ;;  %v1131_v7 = vadd.f32 %v1066_v58, %v888_v3  ;;  %v1188_v14 = vmul.f32 %v1132_v63, %v1132_v63  ;;  %v1153_v26 = vsel %vm1143_vm0, %v1132_v63, 0.0 }
 0x222   : > { %v1203_v10 = vadd.f32 %v1202_v6, %v1201_v1  ;;  %v1150_v11 = vadd.f32 %v1149_v5, %v1148_v2  ;;  %v1529_v12 = vpop.f32.mrf.mxu0  ;;  %v1102_v58 = vrot.slane %v1042_v42, %v1755_v22  ;;  %v1046_v63 = vcombine.high %v1042_v42, %v1042_v42 }
 0x223   : > { %v1151_v15 = vsel %vm1143_vm0, %v1131_v7, 0.0  ;;  %v1187_v16 = vmul.f32 %v1131_v7, %v1131_v7  ;;  %v1134_v18 = vadd.f32 %v1529_v12, %v1078_v8  ;;  %v1208_v34 = vsel %vm1143_vm0, %v1188_v14, 0.0 }
 0x224   : > { %v1152_v19 = vadd.f32 %v1151_v15, %v1150_v11  ;;  %v1205_v20 = vadd.f32 %v1204_v9, %v1203_v10  ;;  %v898_v21 = vpop.f32.mrf.mxu0  ;;  %v1110_v15 = vrot.slane %v1046_v63, %v1755_v22 }
 0x225   : > { %v1206_v27 = vsel %vm1143_vm0, %v1187_v16, 0.0  ;;  %v1133_v28 = vadd.f32 %v1074_v13, %v898_v21  ;;  %v1190_v30 = vmul.f32 %v1134_v18, %v1134_v18  ;;  %v1157_v44 = vsel %vm1143_vm0, %v1134_v18, 0.0 }
 0x226   : > { %v1207_v29 = vadd.f32 %v1206_v27, %v1205_v20  ;;  %v1154_v31 = vadd.f32 %v1153_v26, %v1152_v19  ;;  %v1532_v32 = vpop.f32.mrf.mxu0  ;;  %v1106_v21 = vrot.slane %v1044_v4, %v1755_v22 }
 0x227   : > { %v1155_v35 = vsel %vm1143_vm0, %v1133_v28, 0.0  ;;  %v1189_v37 = vmul.f32 %v1133_v28, %v1133_v28  ;;  %v1136_v38 = vadd.f32 %v1532_v32, %v1086_v23  ;;  %v1212_v49 = vsel %vm1143_vm0, %v1190_v30, 0.0 }
 0x228   : > { %v1156_v39 = vadd.f32 %v1155_v35, %v1154_v31  ;;  %v1209_v40 = vadd.f32 %v1208_v34, %v1207_v29  ;;  %v908_v41 = vpop.f32.mrf.mxu0 }
 0x229   : > { %v1210_v45 = vsel %vm1143_vm0, %v1189_v37, 0.0  ;;  %v1135_v46 = vadd.f32 %v1082_v25, %v908_v41  ;;  %v1192_v54 = vmul.f32 %v1136_v38, %v1136_v38  ;;  %v1161_v60 = vsel %vm1143_vm0, %v1136_v38, 0.0 }
 0x22a   : > { %v1211_v50 = vadd.f32 %v1210_v45, %v1209_v40  ;;  %v1158_v51 = vadd.f32 %v1157_v44, %v1156_v39  ;;  %v1535_v52 = vpop.f32.mrf.mxu0 }
 0x22b   : > { %v1159_v48 = vsel %vm1143_vm0, %v1135_v46, 0.0  ;;  %v1191_v55 = vmul.f32 %v1135_v46, %v1135_v46  ;;  %v1138_v56 = vadd.f32 %v1535_v52, %v1094_v47  ;;  %v1216_v5 = vsel %vm1143_vm0, %v1192_v54, 0.0 }
 0x22c   : > { %v1160_v17 = vadd.f32 %v1159_v48, %v1158_v51  ;;  %v1213_v36 = vadd.f32 %v1212_v49, %v1211_v50  ;;  %v918_v57 = vpop.f32.mrf.mxu0 }
 0x22d   : > { %v1214_v61 = vsel %vm1143_vm0, %v1191_v55, 0.0  ;;  %v1137_v62 = vadd.f32 %v1090_v53, %v918_v57  ;;  %v1194_v1 = vmul.f32 %v1138_v56, %v1138_v56  ;;  %v1165_v12 = vsel %vm1143_vm0, %v1138_v56, 0.0 }
 0x22e   : > { %v1215_v0 = vadd.f32 %v1214_v61, %v1213_v36  ;;  %v1162_v2 = vadd.f32 %v1161_v60, %v1160_v17  ;;  %v1538_v3 = vpop.f32.mrf.mxu0 }
 0x22f   : > { %v1163_v6 = vsel %vm1143_vm0, %v1137_v62, 0.0  ;;  %v1193_v7 = vmul.f32 %v1137_v62, %v1137_v62  ;;  %v1140_v8 = vadd.f32 %v1538_v3, %v1102_v58  ;;  %v1220_v16 = vsel %vm1143_vm0, %v1194_v1, 0.0 }
 0x230   : > { %v1164_v9 = vadd.f32 %v1163_v6, %v1162_v2  ;;  %v1217_v10 = vadd.f32 %v1216_v5, %v1215_v0  ;;  %v928_v11 = vpop.f32.mrf.mxu0 }
 0x231   : > { %v1218_v13 = vsel %vm1143_vm0, %v1193_v7, 0.0  ;;  %v1139_v14 = vadd.f32 %v1098_v59, %v928_v11  ;;  %v1196_v23 = vmul.f32 %v1140_v8, %v1140_v8  ;;  %v1169_v30 = vsel %vm1143_vm0, %v1140_v8, 0.0 }
 0x232   : > { %v1219_v18 = vadd.f32 %v1218_v13, %v1217_v10  ;;  %v1166_v19 = vadd.f32 %v1165_v12, %v1164_v9  ;;  %v1541_v20 = vpop.f32.mrf.mxu0 }
 0x233   : > { %v1167_v25 = vsel %vm1143_vm0, %v1139_v14, 0.0  ;;  %v1195_v26 = vmul.f32 %v1139_v14, %v1139_v14  ;;  %v1142_v27 = vadd.f32 %v1541_v20, %v1110_v15  ;;  %v1224_v35 = vsel %vm1143_vm0, %v1196_v23, 0.0 }
 0x234   : > { %v1168_v28 = vadd.f32 %v1167_v25, %v1166_v19  ;;  %v1221_v24 = vadd.f32 %v1220_v16, %v1219_v18  ;;  %v938_v29 = vpop.f32.mrf.mxu0 }
 0x235   : > { %v1222_v31 = vsel %vm1143_vm0, %v1195_v26, 0.0  ;;  %v1141_v32 = vadd.f32 %v1106_v21, %v938_v29  ;;  %v1198_v37 = vmul.f32 %v1142_v27, %v1142_v27  ;;  %v1173_v41 = vsel %vm1143_vm0, %v1142_v27, 0.0 }
 0x236   : > { %v1223_v33 = vadd.f32 %v1222_v31, %v1221_v24  ;;  %v1170_v34 = vadd.f32 %v1169_v30, %v1168_v28 }
 0x237   : > { %v1171_v22 = vsel %vm1143_vm0, %v1141_v32, 0.0  ;;  %v1197_v38 = vmul.f32 %v1141_v32, %v1141_v32  ;;  %v1228_v45 = vsel %vm1143_vm0, %v1198_v37, 0.0 }
 0x238   : > { %v1172_v39 = vadd.f32 %v1171_v22, %v1170_v34  ;;  %v1225_v40 = vadd.f32 %v1224_v35, %v1223_v33 }
 0x239   : > { %v1226_v42 = vsel %vm1143_vm0, %v1197_v38, 0.0 }
 0x23a   : > { %v1174_v43 = vadd.f32 %v1173_v41, %v1172_v39  ;;  %v1227_v44 = vadd.f32 %v1226_v42, %v1225_v40 }
 0x23c   : > { %v1175_v46 = vrot.slane %v1174_v43, 4  ;;  %v1229_v47 = vadd.f32 %v1228_v45, %v1227_v44 }
 0x23e   : > { %v1176_v49 = vadd.f32 %v1175_v46, %v1174_v43  ;;  %v1230_v50 = vrot.slane %v1229_v47, 4 }
 0x240   : > { %v1177_v51 = vrot.slane %v1176_v49, 2  ;;  %v1231_v52 = vadd.f32 %v1230_v50, %v1229_v47 }
 0x242   : > { %v1178_v53 = vadd.f32 %v1177_v51, %v1176_v49  ;;  %v1232_v54 = vrot.slane %v1231_v52, 2 }
 0x244   : > { %v1179_v48 = vrot.slane %v1178_v53, 1  ;;  %v1233_v55 = vadd.f32 %v1232_v54, %v1231_v52 }
 0x246   : > { %v1180_v56 = vadd.f32 %v1179_v48, %v1178_v53  ;;  %v1234_v17 = vrot.slane %v1233_v55, 1 }
 0x248   : > { %1182 = vst.msk [vmem:[%s350_s26] sm:$0x1] %vm1181_vm2, %v1180_v56  ;;  %v1235_v36 = vadd.f32 %v1234_v17, %v1233_v55 }
 0x24a   : > { %1236 = vst.msk [vmem:[%s356_s29] sm:$0x1] %vm1181_vm2, %v1235_v36 }
 0x24b PF: > { %s17_s23 = sadd.s32 1, %s1593_s23   ;;  %s1845_s21 = smov %s1589_s22 }
 0x24c   : > { %p14_p5 = scmp.ge.s32.totalorder %s17_s23, 4   ;;  %s1846_s22 = smov %s1848_s24 }
 0x24e   :  { %16 = sbr.rel (!%p14_p5) target bundleno = 2 (0x2), region = 88 }

// kernel: graph_attention_forward.3
= control target key start
LH: loop header
LB: loop body
LE: loop exit
PB: predicated region body
PF: predicated region fallthrough
CT: control target
= control target key end

     0   :  { %s2287_s24 = smov 0   ;;  %s2289_s25 = smov 0   ;;  %s2811_s0 = inlined_call_operand.vmem [shape: f32[2,16,16], index: 0, kind: input, shape index: {}, may-alias: {0,1}]   ;;  %s2812_s1 = inlined_call_operand.vmem [shape: f32[2,16,16], index: 1, kind: input, shape index: {}, may-alias: {0,1}]   ;;  %s2813_s2 = inlined_call_operand.vmem [shape: s32[2,16,8,1], index: 2, kind: input, shape index: {}]   ;;  %s2814_s3 = inlined_call_operand.vmem [shape: f32[16,32], index: 3, kind: input, shape index: {}]   ;;  %s2815_s4 = inlined_call_operand.vmem [shape: f32[16,32], index: 4, kind: input, shape index: {}]   ;;  %s2816_s5 = inlined_call_operand.vmem [shape: f32[2,32], index: 5, kind: input, shape index: {}]   ;;  %s2817_s6 = inlined_call_operand.vmem [shape: f32[2,32,128], index: 6, kind: input, shape index: {}]   ;;  %s2818_s7 = inlined_call_operand.vmem [shape: f32[2,32,16], index: 7, kind: output, shape index: {}]  }
   0x1   :  { %s2291_s26 = smov 0  }
   0x2 LB: > { %s29_s27 = sadd.s32 1, %s2238_s25  ;;  %p1956_p0 = scmp.ge.s32.totalorder %s2242_s26, 1  ;;  %s2242_s26 = sphi %s2291_s26, %s17_s26   ;;  %s2238_s25 = sphi %s2289_s25, %s2820_s25   ;;  %s2234_s24 = sphi %s2287_s24, %s2819_s24  }
   0x3   : > { %p31_p1 = scmp.ge.s32.totalorder %s29_s27, 2  ;;  %p300_p2 = scmp.lt.s32.totalorder %s2242_s26, 3 }
   0x5   : > { %s2822_s27 = smov (%p31_p1, %s29_s27), 0  ;;  %p301_p3 = pnand %p1956_p0, %p300_p2 }
   0x6   : > { %p361_p4 = scmp.lt.s32.totalorder (!%p301_p3), %s2234_s24, 1 }
   0x7   : > { %304 = sbr.rel (%p301_p3) target bundleno = 823 (0x337), region = 48 }
   0xc   : > { %v2244_v0 = vmov 0   ;;  %s2824_s24 = smov (!%p361_p4, %s2234_s24), 1  ;;  %v405_v19 = vld [vmem:[%s2814_s3 + $0x8] sm:$0xff]  ;;  %v404_v20 = vld [vmem:[%s2814_s3] sm:$0xff]  ;;  %vm406_vm0 = vcmask 130048   ;;  %v504_v24 = vlaneseq  ;;  %v2245_v28 = vmov 0.0  }
   0xd   : > { %2155 = vset.pattern.permute.xlu1 %v2244_v0  ;;  %2154 = vset.pattern.permute.xlu0 %v2244_v0  ;;  %s2021_s28 = sshll.u32 %s2824_s24, 7  ;;  %s2019_s9 = sshll.u32 %s2824_s24, 4  ;;  %v798_v23 = vld [vmem:[%s2815_s4 + $0x8] sm:$0xff]  ;;  %v797_v59 = vld [vmem:[%s2815_s4] sm:$0xff] }
   0xe   : > { %s2311_s8 = scalar_lea.vmem %s2813_s2, %s2021_s28  ;;  %s365_s12 = scalar_lea.vmem %s2811_s0, %s2019_s9  ;;  %2064 = vmatprep.subr.mxu0 %v405_v19  ;;  %v2352_v25 = vand.u32 127, %v504_v24 }
   0xf   : > { %v490_v1 = vld [vmem:[%s2311_s8 + $0x10] sm:$0xff]  ;;  %v488_v2 = vld [vmem:[%s2311_s8] sm:$0xff]  ;;  %v491_v3 = vld [vmem:[%s2311_s8 + $0x18] sm:$0xff]  ;;  %s374_s19 = scalar_lea.vmem %s2812_s1, %s2019_s9  ;;  %2065 = vmatpush3.msra.mxu0 %v405_v19  ;;  %s2022_s28 = sshll.u32 %s2824_s24, 5  ;;  %v999_v19 = vshrl.u32 %v504_v24, 7 }
  0x10   : > { %513 = vperm.xlu1 %2155, %v490_v1   ;;  %507 = vperm.xlu0 %2154, %v488_v2   ;;  %v489_v4 = vld [vmem:[%s2311_s8 + $0x8] sm:$0xff]  ;;  %v602_v6 = vld [vmem:[%s365_s12] sm:$0xff]  ;;  %v495_v9 = vld [vmem:[%s2311_s8 + $0x38] sm:$0xff]  ;;  %s401_s13 = scalar_lea.vmem %s2818_s7, %s2022_s28 }
  0x11   : > { %v603_v5 = vld [vmem:[%s365_s12 + $0x8] sm:$0xff]  ;;  %v492_v8 = vld [vmem:[%s2311_s8 + $0x20] sm:$0xff]  ;;  %v494_v10 = vld [vmem:[%s2311_s8 + $0x30] sm:$0xff]  ;;  %2066 = vmatprep.subr.mxu0 %v404_v20 }
  0x12   : > { %v493_v7 = vld [vmem:[%s2311_s8 + $0x28] sm:$0xff]  ;;  %2071 = vmatprep.subr.mxu1 %v603_v5  ;;  %v496_v12 = vld [vmem:[%s2311_s8 + $0x40] sm:$0xff]  ;;  %v499_v13 = vld [vmem:[%s2311_s8 + $0x58] sm:$0xff]  ;;  %2067 = vmatpush3.msra.mxu0 %v404_v20 }
  0x13   : > { %2072 = vmatpush3.msra.mxu1 %v603_v5  ;;  %v497_v11 = vld [vmem:[%s2311_s8 + $0x48] sm:$0xff]  ;;  %v498_v14 = vld [vmem:[%s2311_s8 + $0x50] sm:$0xff]  ;;  %v500_v16 = vld [vmem:[%s2311_s8 + $0x60] sm:$0xff]  ;;  %2099 = vmatprep.subr.mxu0 %v798_v23 }
  0x14   : > { %516 = vperm.xlu1 %2155, %v491_v3   ;;  %510 = vperm.xlu0 %2154, %v489_v4   ;;  %v501_v15 = vld [vmem:[%s2311_s8 + $0x68] sm:$0xff]  ;;  %v503_v17 = vld [vmem:[%s2311_s8 + $0x78] sm:$0xff]  ;;  %v502_v18 = vld [vmem:[%s2311_s8 + $0x70] sm:$0xff]  ;;  %s393_s8 = scalar_lea.vmem %s2817_s6, %s2022_s28 }
  0x15   : > { %2073 = vmatprep.subr.mxu1 %v602_v6  ;;  %v402_v21 = vld [vmem:[%s374_s19] sm:$0xff]  ;;  %v403_v22 = vld [vmem:[%s374_s19 + $0x8] sm:$0xff]  ;;  %v1568_v62 = vld [vmem:[%s393_s8 + $0x10] sm:$0xff] }
  0x16   : > { %2074 = vmatpush3.msra.mxu1 %v602_v6  ;;  %2068 = vmatprep.mubr.msk.f32.mxu0 %vm406_vm0, %v402_v21  ;;  %v1566_v60 = vld [vmem:[%s393_s8] sm:$0xff]  ;;  %v1567_v61 = vld [vmem:[%s393_s8 + $0x8] sm:$0xff]  ;;  %v1569_v63 = vld [vmem:[%s393_s8 + $0x18] sm:$0xff] }
  0x17   : > { %2069 = vmatmul.mubr.msk.f32.vlgmr.msra.gmra.mxu0 %vm406_vm0, %v403_v22  ;;  %v1188_v24 = vld [vmem:[%s2816_s5] sm:$0x3] }
  0x18   : > { %522 = vperm.xlu1 %2155, %v493_v7   ;;  %519 = vperm.xlu0 %2154, %v492_v8  }
  0x19   : > { %2100 = vmatpush3.msra.mxu0 %v798_v23 }
  0x1a   : > { %2101 = vmatprep.subr.mxu0 %v797_v59 }
  0x1b   : > { %2102 = vmatpush3.msra.mxu0 %v797_v59 }
  0x1c   : > { %528 = vperm.xlu1 %2155, %v495_v9   ;;  %525 = vperm.xlu0 %2154, %v494_v10  }
  0x20   : > { %534 = vperm.xlu1 %2155, %v497_v11   ;;  %531 = vperm.xlu0 %2154, %v496_v12  }
  0x24   : > { %540 = vperm.xlu1 %2155, %v499_v13   ;;  %537 = vperm.xlu0 %2154, %v498_v14  }
  0x28   : > { %546 = vperm.xlu1 %2155, %v501_v15   ;;  %543 = vperm.xlu0 %2154, %v500_v16   ;;  %v2246_v16 = vmov 1966171168  }
  0x2c   : > { %552 = vperm.xlu1 %2155, %v503_v17   ;;  %549 = vperm.xlu0 %2154, %v502_v18   ;;  %v996_v17 = vunpack.c.l.s4 %v2246_v16 }
  0x2e   : > { %v997_v18 = vunpack.c.0.s8 %v996_v17 }
  0x30   : > { %v2414_v21 = vsub.s32 %v997_v18, %v999_v19 }
  0x4a   : > { %1570 = vxpose.xlu0.b32.start [1/4] (short) %v1566_v60, 128 }
  0x4e   : > { %1571 = vxpose.xlu0.b32.cont [2/4] (short) %v1567_v61, 128 }
  0x52   : > { %1572 = vxpose.xlu0.b32.cont [3/4] (short) %v1568_v62, 128 }
  0x56   : > { %1573 = vxpose.xlu0.b32.end [4/4] (short) %v1569_v63, 128 }
  0x8b   : > { %v514_v26 = vpop.permute.xlu1 %513  ;;  %v508_v27 = vpop.permute.xlu0 %507 }
  0x8c   : > { %vm554_vm1 = vcmp.eq.s32.totalorder %v2352_v25, %v508_v27  ;;  %vm556_vm2 = vcmp.eq.s32.totalorder %v2352_v25, %v514_v26 }
  0x8d   : > { %v1969_v29 = vsel %vm554_vm1, 1.0, %v2245_v28  ;;  %v1971_v32 = vsel %vm556_vm2, 1.0, %v2245_v28  ;;  %vm1277_vm2 = vcmask 261120  }
  0x8e   : > { %2075 = vmatprep.mubr.msk.f32.mxu1 %vm406_vm0, %v1969_v29 }
  0x8f   : > { %v517_v30 = vpop.permute.xlu1 %516  ;;  %v511_v31 = vpop.permute.xlu0 %510 }
  0x90   : > { %vm555_vm3 = vcmp.eq.s32.totalorder %v2352_v25, %v511_v31  ;;  %vm557_vm4 = vcmp.eq.s32.totalorder %v2352_v25, %v517_v30 }
  0x91   : > { %v1970_v33 = vsel %vm555_vm3, 1.0, %v2245_v28  ;;  %v1972_v36 = vsel %vm557_vm4, 1.0, %v2245_v28 }
  0x92   : > { %2076 = vmatmul.mubr.msk.f32.vlgmr.msra.gmra.mxu1 %vm406_vm0, %v1970_v33 }
  0x93   : > { %v523_v34 = vpop.permute.xlu1 %522  ;;  %v520_v35 = vpop.permute.xlu0 %519  ;;  %2078 = vmatprep.mubr.msk.f32.mxu1 %vm406_vm0, %v1971_v32  ;;  %v1211_v32 = vsub.s32 1, %v999_v19 }
  0x94   : > { %vm558_vm5 = vcmp.eq.s32.totalorder %v2352_v25, %v520_v35  ;;  %vm559_vm6 = vcmp.eq.s32.totalorder %v2352_v25, %v523_v34 }
  0x95   : > { %v1973_v37 = vsel %vm558_vm5, 1.0, %v2245_v28  ;;  %v1974_v40 = vsel %vm559_vm6, 1.0, %v2245_v28 }
  0x96   : > { %2079 = vmatmul.mubr.msk.f32.gmra.mxu1 %vm406_vm0, %v1972_v36 }
  0x97   : > { %v529_v38 = vpop.permute.xlu1 %528  ;;  %v526_v39 = vpop.permute.xlu0 %525  ;;  %2081 = vmatprep.mubr.msk.f32.mxu1 %vm406_vm0, %v1973_v37 }
  0x98   : > { %vm560_vm7 = vcmp.eq.s32.totalorder %v2352_v25, %v526_v39  ;;  %vm561_vm8 = vcmp.eq.s32.totalorder %v2352_v25, %v529_v38  ;;  %v2430_v39 = vrot.slane %v1188_v24, %v1211_v32 }
  0x99   : > { %v1975_v41 = vsel %vm560_vm7, 1.0, %v2245_v28  ;;  %v1976_v44 = vsel %vm561_vm8, 1.0, %v2245_v28 }
  0x9a   : > { %2082 = vmatmul.mubr.msk.f32.gmra.mxu1 %vm406_vm0, %v1974_v40 }
  0x9b   : > { %v535_v42 = vpop.permute.xlu1 %534  ;;  %v532_v43 = vpop.permute.xlu0 %531  ;;  %2084 = vmatprep.mubr.msk.f32.mxu1 %vm406_vm0, %v1975_v41 }
  0x9c   : > { %vm562_vm9 = vcmp.eq.s32.totalorder %v2352_v25, %v532_v43  ;;  %vm563_vm10 = vcmp.eq.s32.totalorder %v2352_v25, %v535_v42 }
  0x9d   : > { %v1977_v45 = vsel %vm562_vm9, 1.0, %v2245_v28  ;;  %v1978_v48 = vsel %vm563_vm10, 1.0, %v2245_v28 }
  0x9e   : > { %2085 = vmatmul.mubr.msk.f32.gmra.mxu1 %vm406_vm0, %v1976_v44 }
  0x9f   : > { %v541_v46 = vpop.permute.xlu1 %540  ;;  %v538_v47 = vpop.permute.xlu0 %537  ;;  %2087 = vmatprep.mubr.msk.f32.mxu1 %vm406_vm0, %v1977_v45 }
  0xa0   : > { %vm564_vm11 = vcmp.eq.s32.totalorder %v2352_v25, %v538_v47  ;;  %vm565_vm12 = vcmp.eq.s32.totalorder %v2352_v25, %v541_v46 }
  0xa1   : > { %v1979_v49 = vsel %vm564_vm11, 1.0, %v2245_v28  ;;  %v1980_v52 = vsel %vm565_vm12, 1.0, %v2245_v28 }
  0xa2   : > { %2088 = vmatmul.mubr.msk.f32.gmra.mxu1 %vm406_vm0, %v1978_v48 }
  0xa3   : > { %v547_v50 = vpop.permute.xlu1 %546  ;;  %v544_v51 = vpop.permute.xlu0 %543  ;;  %2090 = vmatprep.mubr.msk.f32.mxu1 %vm406_vm0, %v1979_v49 }
  0xa4   : > { %vm566_vm13 = vcmp.eq.s32.totalorder %v2352_v25, %v544_v51  ;;  %vm567_vm14 = vcmp.eq.s32.totalorder %v2352_v25, %v547_v50 }
  0xa5   : > { %v1981_v53 = vsel %vm566_vm13, 1.0, %v2245_v28  ;;  %v1982_v56 = vsel %vm567_vm14, 1.0, %v2245_v28 }
  0xa6   : > { %2091 = vmatmul.mubr.msk.f32.gmra.mxu1 %vm406_vm0, %v1980_v52 }
  0xa7   : > { %v553_v54 = vpop.permute.xlu1 %552  ;;  %v550_v55 = vpop.permute.xlu0 %549  ;;  %2093 = vmatprep.mubr.msk.f32.mxu1 %vm406_vm0, %v1981_v53 }
  0xa8   : > { %vm568_vm15 = vcmp.eq.s32.totalorder %v2352_v25, %v550_v55  ;;  %vm569_vm1 = vcmp.eq.s32.totalorder %v2352_v25, %v553_v54 }
  0xa9   : > { %v1983_v57 = vsel %vm568_vm15, 1.0, %v2245_v28  ;;  %v1984_v58 = vsel %vm569_vm1, 1.0, %v2245_v28  ;;  %v2418_v28 = vsub.s32 0, %v999_v19 }
  0xaa   : > { %2094 = vmatmul.mubr.msk.f32.gmra.mxu1 %vm406_vm0, %v1982_v56 }
  0xab   : > { %2096 = vmatprep.mubr.msk.f32.mxu1 %vm406_vm0, %v1983_v57  ;;  %v2427_v35 = vrot.slane %v1188_v24, %v2418_v28 }
  0xae   : > { %2097 = vmatmul.mubr.msk.f32.gmra.mxu1 %vm406_vm0, %v1984_v58 }
  0xd7   : > { %v2412_v20 = vpop.f32.mrf.mxu0 }
  0xd8   : > { %v2435_v41 = vrot.slane %v2412_v20, %v2414_v21 }
  0xd9   : > { %v479_v22 = vpop.f32.mrf.mxu0 }
  0xda   : > { %v1001_v23 = vrot.slane %v479_v22, %v2414_v21  ;;  %v994_v26 = vcombine.high %v479_v22, %v479_v22  ;;  %v1058_v52 = vcombine.high %v2435_v41, %v2435_v41 }
  0xdc   : > { %v1009_v25 = vcombine.high %v1001_v23, %v1001_v23  ;;  %v1008_v29 = vrot.slane %v994_v26, %v2414_v21  ;;  %v1017_v30 = vrot.slane %v1001_v23, %v2414_v21 }
  0xde   : > { %v1031_v27 = vrot.slane %v1009_v25, %v2414_v21  ;;  %v1010_v34 = vcombine.high %v1008_v29, %v1008_v29  ;;  %v1095_v36 = vrot.slane %v1017_v30, %v2418_v28  ;;  %v1039_v43 = vcombine.high %v1017_v30, %v1017_v30 }
  0xdf   : > { %v2440_v48 = vrot.slane %v1008_v29, %v2414_v21 }
  0xe0   : > { %v1099_v31 = vrot.slane %v1031_v27, %v2418_v28  ;;  %v1041_v33 = vcombine.high %v1031_v27, %v1031_v27  ;;  %v1038_v44 = vrot.slane %v1010_v34, %v2414_v21  ;;  %v1103_v54 = vrot.slane %v1039_v43, %v2418_v28 }
  0xe1   : > { %v1111_v62 = vrot.slane %v2440_v48, %v2418_v28  ;;  %v1040_v63 = vcombine.high %v2440_v48, %v2440_v48 }
  0xe2   : > { %v1107_v40 = vrot.slane %v1041_v33, %v2418_v28  ;;  %v1042_v55 = vcombine.high %v1038_v44, %v1038_v44  ;;  %v1115_v61 = vrot.slane %v1038_v44, %v2418_v28 }
 0x152   : > { %v2077_v0 = vpop.f32.mrf.mxu1 }
 0x154   : > { %v718_v1 = vpop.f32.mrf.mxu1 }
 0x155   : > { %2103 = vmatprep.mubr.msk.f32.mxu0 %vm406_vm0, %v718_v1 }
 0x156   : > { %v2080_v2 = vpop.f32.mrf.mxu1  ;;  %2104 = vmatmul.mubr.msk.f32.vlgmr.msra.gmra.mxu0 %vm406_vm0, %v2077_v0 }
 0x158   : > { %v728_v3 = vpop.f32.mrf.mxu1 }
 0x159   : > { %2106 = vmatprep.mubr.msk.f32.mxu0 %vm406_vm0, %v728_v3 }
 0x15a   : > { %v2083_v4 = vpop.f32.mrf.mxu1  ;;  %2107 = vmatmul.mubr.msk.f32.gmra.mxu0 %vm406_vm0, %v2080_v2 }
 0x15c   : > { %v738_v5 = vpop.f32.mrf.mxu1 }
 0x15d   : > { %2109 = vmatprep.mubr.msk.f32.mxu0 %vm406_vm0, %v738_v5 }
 0x15e   : > { %v2086_v6 = vpop.f32.mrf.mxu1  ;;  %2110 = vmatmul.mubr.msk.f32.gmra.mxu0 %vm406_vm0, %v2083_v4 }
 0x160   : > { %v748_v7 = vpop.f32.mrf.mxu1 }
 0x161   : > { %2112 = vmatprep.mubr.msk.f32.mxu0 %vm406_vm0, %v748_v7  ;;  %v1123_v7 = vrot.slane %v1042_v55, %v2418_v28 }
 0x162   : > { %v2089_v8 = vpop.f32.mrf.mxu1  ;;  %2113 = vmatmul.mubr.msk.f32.gmra.mxu0 %vm406_vm0, %v2086_v6 }
 0x164   : > { %v758_v9 = vpop.f32.mrf.mxu1 }
 0x165   : > { %2115 = vmatprep.mubr.msk.f32.mxu0 %vm406_vm0, %v758_v9 }
 0x166   : > { %v2092_v10 = vpop.f32.mrf.mxu1  ;;  %2116 = vmatmul.mubr.msk.f32.gmra.mxu0 %vm406_vm0, %v2089_v8 }
 0x168   : > { %v768_v11 = vpop.f32.mrf.mxu1 }
 0x169   : > { %2118 = vmatprep.mubr.msk.f32.mxu0 %vm406_vm0, %v768_v11 }
 0x16a   : > { %v2095_v12 = vpop.f32.mrf.mxu1  ;;  %2119 = vmatmul.mubr.msk.f32.gmra.mxu0 %vm406_vm0, %v2092_v10 }
 0x16c   : > { %v778_v13 = vpop.f32.mrf.mxu1 }
 0x16d   : > { %2121 = vmatprep.mubr.msk.f32.mxu0 %vm406_vm0, %v778_v13 }
 0x16e   : > { %v2098_v14 = vpop.f32.mrf.mxu1  ;;  %2122 = vmatmul.mubr.msk.f32.gmra.mxu0 %vm406_vm0, %v2095_v12 }
 0x170   : > { %v788_v15 = vpop.f32.mrf.mxu1 }
 0x171   : > { %2124 = vmatprep.mubr.msk.f32.mxu0 %vm406_vm0, %v788_v15 }
 0x172   : > { %2125 = vmatmul.mubr.msk.f32.gmra.mxu0 %vm406_vm0, %v2098_v14 }
 0x216   : > { %v2105_v37 = vpop.f32.mrf.mxu0 }
 0x217   : > { %v1173_v38 = vadd.f32 %v2105_v37, %v1099_v31 }
 0x218   : > { %v913_v42 = vpop.f32.mrf.mxu0 }
 0x219   : > { %v1194_v45 = vmul.f32 %v2427_v35, %v1173_v38  ;;  %v1172_v46 = vadd.f32 %v1095_v36, %v913_v42 }
 0x21a   : > { %v2108_v47 = vpop.f32.mrf.mxu0 }
 0x21b   : > { %v1214_v49 = vadd.f32 %v2430_v39, %v1194_v45  ;;  %v1193_v50 = vmul.f32 %v2427_v35, %v1172_v46  ;;  %v1175_v51 = vadd.f32 %v2108_v47, %v1107_v40 }
 0x21c   : > { %v923_v53 = vpop.f32.mrf.mxu0 }
 0x21d   : > { %vm1230_vm3 = vcmp.ge.f32.partialorder %v1214_v49, 0.0  ;;  %v1246_v56 = vmul.f32 0.2, %v1214_v49  ;;  %v1213_v57 = vadd.f32 %v2430_v39, %v1193_v50  ;;  %v1196_v58 = vmul.f32 %v2427_v35, %v1175_v51 }
 0x21e   : > { %v1174_v59 = vadd.f32 %v1103_v54, %v923_v53  ;;  %v2111_v60 = vpop.f32.mrf.mxu0 }
 0x21f   : > { %v2454_v0 = vsel %vm1230_vm3, %v1214_v49, %v1246_v56  ;;  %vm1229_vm4 = vcmp.ge.f32.partialorder %v1213_v57, 0.0  ;;  %v1245_v1 = vmul.f32 0.2, %v1213_v57  ;;  %v1216_v2 = vadd.f32 %v2430_v39, %v1196_v58 }
 0x220   : > { %v1285_v3 = vsel %vm1277_vm2, %v2454_v0, -inf  ;;  %v1195_v4 = vmul.f32 %v2427_v35, %v1174_v59  ;;  %v1177_v5 = vadd.f32 %v2111_v60, %v1115_v61  ;;  %v933_v6 = vpop.f32.mrf.mxu0  ;;  %v2488_v56 = vrot.slane %v1058_v52, %v2414_v21 }
 0x221   : > { %v1286_v8 = vrot.slane %v1285_v3, 4  ;;  %v2461_v9 = vsel %vm1229_vm4, %v1213_v57, %v1245_v1  ;;  %vm1232_vm5 = vcmp.ge.f32.partialorder %v1216_v2, 0.0  ;;  %v1248_v10 = vmul.f32 0.2, %v1216_v2 }
 0x222   : > { %v1278_v11 = vsel %vm1277_vm2, %v2461_v9, -inf  ;;  %v1215_v12 = vadd.f32 %v2430_v39, %v1195_v4  ;;  %v1198_v13 = vmul.f32 %v2427_v35, %v1177_v5  ;;  %v1176_v14 = vadd.f32 %v1111_v62, %v933_v6  ;;  %v2114_v15 = vpop.f32.mrf.mxu0 }
 0x223   : > { %v1287_v16 = vmax.f32 %v1285_v3, %v1286_v8  ;;  %v1279_v17 = vrot.slane %v1278_v11, 4  ;;  %v2467_v18 = vsel %vm1232_vm5, %v1216_v2, %v1248_v10  ;;  %v1179_v19 = vadd.f32 %v2114_v15, %v1123_v7 }
 0x224   : > { %v1299_v22 = vsel %vm1277_vm2, %v2467_v18, -inf  ;;  %vm1231_vm6 = vcmp.ge.f32.partialorder %v1215_v12, 0.0  ;;  %v1247_v23 = vmul.f32 0.2, %v1215_v12  ;;  %v1218_v25 = vadd.f32 %v2430_v39, %v1198_v13  ;;  %v943_v53 = vpop.f32.mrf.mxu0 }
 0x225   : > { %v1288_v26 = vrot.slane %v1287_v16, 2  ;;  %v1280_v27 = vmax.f32 %v1278_v11, %v1279_v17  ;;  %v1300_v29 = vrot.slane %v1299_v22, 4  ;;  %v1197_v30 = vmul.f32 %v2427_v35, %v1176_v14 }
 0x226   : > { %v2473_v24 = vsel %vm1231_vm6, %v1215_v12, %v1247_v23  ;;  %vm1234_vm7 = vcmp.ge.f32.partialorder %v1218_v25, 0.0  ;;  %v1250_v31 = vmul.f32 0.2, %v1218_v25  ;;  %v1200_v32 = vmul.f32 %v2427_v35, %v1179_v19  ;;  %v2117_v7 = vpop.f32.mrf.mxu0 }
 0x227   : > { %v1289_v33 = vmax.f32 %v1287_v16, %v1288_v26  ;;  %v1281_v34 = vrot.slane %v1280_v27, 2  ;;  %v1301_v36 = vmax.f32 %v1299_v22, %v1300_v29  ;;  %v1292_v37 = vsel %vm1277_vm2, %v2473_v24, -inf }
 0x228   : > { %v1293_v38 = vrot.slane %v1292_v37, 4  ;;  %v2478_v40 = vsel %vm1234_vm7, %v1218_v25, %v1250_v31  ;;  %v1217_v42 = vadd.f32 %v2430_v39, %v1197_v30  ;;  %v1220_v43 = vadd.f32 %v2430_v39, %v1200_v32 }
 0x229   : > { %v1290_v44 = vrot.slane %v1289_v33, 1  ;;  %v1282_v45 = vmax.f32 %v1280_v27, %v1281_v34  ;;  %v1302_v46 = vrot.slane %v1301_v36, 2  ;;  %v1313_v47 = vsel %vm1277_vm2, %v2478_v40, -inf }
 0x22a   : > { %v1294_v49 = vmax.f32 %v1292_v37, %v1293_v38  ;;  %v1314_v50 = vrot.slane %v1313_v47, 4  ;;  %vm1233_vm8 = vcmp.ge.f32.partialorder %v1217_v42, 0.0  ;;  %v1249_v51 = vmul.f32 0.2, %v1217_v42 }
 0x22b   : > { %v1291_v54 = vmax.f32 %v1289_v33, %v1290_v44  ;;  %v1283_v55 = vrot.slane %v1282_v45, 1  ;;  %vm1236_vm9 = vcmp.ge.f32.partialorder %v1220_v43, 0.0  ;;  %v1252_v60 = vmul.f32 0.2, %v1220_v43 }
 0x22c   : > { %v1295_v57 = vrot.slane %v1294_v49, 2  ;;  %v1315_v58 = vmax.f32 %v1313_v47, %v1314_v50  ;;  %v2490_v59 = vsel %vm1233_vm8, %v1217_v42, %v1249_v51  ;;  %v1303_v1 = vmax.f32 %v1301_v36, %v1302_v46  ;;  %v1586_v46 = vpop.trf.xlu0 }
 0x22d   : > { %v1391_v61 = vsub.f32 %v2454_v0, %v1291_v54  ;;  %v1284_v62 = vmax.f32 %v1282_v45, %v1283_v55  ;;  %v1306_v2 = vsel %vm1277_vm2, %v2490_v59, -inf  ;;  %v2495_v6 = vsel %vm1236_vm9, %v1220_v43, %v1252_v60 }
 0x22e   : > { %v1296_v3 = vmax.f32 %v1294_v49, %v1295_v57  ;;  %v1316_v4 = vrot.slane %v1315_v58, 2  ;;  %v1307_v5 = vrot.slane %v1306_v2, 4  ;;  %v2499_v52 = vrot.slane %v2435_v41, %v2414_v21 }
 0x22f   : > { %v1390_v8 = vsub.f32 %v2461_v9, %v1284_v62  ;;  %v1327_v0 = vsel %vm1277_vm2, %v2495_v6, -inf  ;;  %v1119_v10 = vrot.slane %v1040_v63, %v2418_v28  ;;  %v1408_v11 = vmul.f32 1.442695, %v1391_v61  ;;  %v953_v9 = vpop.f32.mrf.mxu0 }
 0x230   : > { %v1297_v12 = vrot.slane %v1296_v3, 1  ;;  %v1317_v13 = vmax.f32 %v1315_v58, %v1316_v4  ;;  %v1308_v14 = vmax.f32 %v1306_v2, %v1307_v5  ;;  %v1304_v17 = vrot.slane %v1303_v1, 1 }
 0x231   : > { %v1406_v15 = vmul.f32 1.442695, %v1390_v8  ;;  %v1178_v16 = vadd.f32 %v1119_v10, %v943_v53  ;;  %v1328_v19 = vrot.slane %v1327_v0, 4  ;;  %v1131_v41 = vrot.slane %v2488_v56, %v2418_v28  ;;  %v2120_v8 = vpop.f32.mrf.mxu0 }
 0x232   : > { %v1318_v22 = vrot.slane %v1317_v13, 1  ;;  %v1127_v25 = vrot.slane %v2499_v52, %v2418_v28  ;;  %2156 = vpow2.f32 %v1408_v11  ;;  %v1298_v48 = vmax.f32 %v1296_v3, %v1297_v12  ;;  %v1587_v3 = vpop.trf.xlu0 }
 0x233   : > { %v1199_v23 = vmul.f32 %v2427_v35, %v1178_v16  ;;  %v1309_v63 = vrot.slane %v1308_v14, 2  ;;  %v1181_v26 = vadd.f32 %v2117_v7, %v1131_v41  ;;  %2158 = vpow2.f32 %v1406_v15 }
 0x234   : > { %v1180_v29 = vadd.f32 %v1127_v25, %v953_v9  ;;  %v1305_v30 = vmax.f32 %v1303_v1, %v1304_v17  ;;  %v1329_v31 = vmax.f32 %v1327_v0, %v1328_v19  ;;  %v1319_v32 = vmax.f32 %v1317_v13, %v1318_v22 }
 0x235   : > { %v1219_v27 = vadd.f32 %v2430_v39, %v1199_v23  ;;  %v1392_v36 = vsub.f32 %v2473_v24, %v1298_v48  ;;  %v1310_v37 = vmax.f32 %v1308_v14, %v1309_v63  ;;  %v1202_v38 = vmul.f32 %v2427_v35, %v1181_v26 }
 0x236   : > { %v1201_v34 = vmul.f32 %v2427_v35, %v1180_v29  ;;  %v1393_v44 = vsub.f32 %v2467_v18, %v1305_v30  ;;  %v1330_v45 = vrot.slane %v1329_v31, 2  ;;  %v1395_v47 = vsub.f32 %v2478_v40, %v1319_v32  ;;  %v1588_v22 = vpop.trf.xlu0 }
 0x237   : > { %vm1235_vm10 = vcmp.ge.f32.partialorder %v1219_v27, 0.0  ;;  %v1251_v33 = vmul.f32 0.2, %v1219_v27  ;;  %v1410_v51 = vmul.f32 1.442695, %v1392_v36  ;;  %v1311_v53 = vrot.slane %v1310_v37, 1 }
 0x238   : > { %v1221_v43 = vadd.f32 %v2430_v39, %v1201_v34  ;;  %v1222_v24 = vadd.f32 %v2430_v39, %v1202_v38  ;;  %v1043_v54 = vcombine.high %v2412_v20, %v2412_v20  ;;  %v1412_v55 = vmul.f32 1.442695, %v1393_v44 }
 0x239   : > { %v2517_v42 = vsel %vm1235_vm10, %v1219_v27, %v1251_v33  ;;  %v1331_v57 = vmax.f32 %v1329_v31, %v1330_v45  ;;  %v1416_v18 = vmul.f32 1.442695, %v1395_v47  ;;  %v1090_v40 = vcombine.high %v2488_v56, %v2488_v56 }
 0x23a   : > { %v1320_v49 = vsel %vm1277_vm2, %v2517_v42, -inf  ;;  %v1253_v50 = vmul.f32 0.2, %v1221_v43  ;;  %vm1237_vm11 = vcmp.ge.f32.partialorder %v1221_v43, 0.0  ;;  %2160 = vpow2.f32 %v1410_v51  ;;  %v963_v51 = vpop.f32.mrf.mxu0 }
 0x23b   : > { %v1321_v58 = vrot.slane %v1320_v49, 4  ;;  %v1312_v61 = vmax.f32 %v1310_v37, %v1311_v53  ;;  %v1254_v62 = vmul.f32 0.2, %v1222_v24  ;;  %v1057_v2 = vrot.slane %v1043_v54, %v2414_v21 }
 0x23c   : > { %v2527_v60 = vsel %vm1237_vm11, %v1221_v43, %v1253_v50  ;;  %vm1238_vm12 = vcmp.ge.f32.partialorder %v1222_v24, 0.0  ;;  %2162 = vpow2.f32 %v1412_v55  ;;  %v1332_v20 = vrot.slane %v1331_v57, 1 }
 0x23d   : > { %v1322_v5 = vmax.f32 %v1320_v49, %v1321_v58  ;;  %v1334_v7 = vsel %vm1277_vm2, %v2527_v60, -inf  ;;  %2164 = vpow2.f32 %v1416_v18  ;;  %v1139_v0 = vrot.slane %v1090_v40, %v2418_v28 }
 0x23e   : > { %v1394_v10 = vsub.f32 %v2490_v59, %v1312_v61  ;;  %v2537_v12 = vsel %vm1238_vm12, %v1222_v24, %v1254_v62  ;;  %v1335_v15 = vrot.slane %v1334_v7, 4  ;;  %v1059_v17 = vcombine.high %v1057_v2, %v1057_v2 }
 0x23f   : > { %v2157_v1 = vpop.eup %2156  ;;  %v1183_v16 = vadd.f32 %v2120_v8, %v1139_v0  ;;  %v1333_v19 = vmax.f32 %v1331_v57, %v1332_v20  ;;  %v1323_v41 = vrot.slane %v1322_v5, 2  ;;  %v1341_v23 = vsel %vm1277_vm2, %v2537_v12, -inf }
 0x240   : > { %v2159_v4 = vpop.eup %2158  ;;  %v1445_v56 = vsel %vm1277_vm2, %v2157_v1, 0.0  ;;  %v1603_v11 = vmul.f32 %v2157_v1, %v1587_v3  ;;  %v1414_v48 = vmul.f32 1.442695, %v1394_v10  ;;  %v1336_v26 = vmax.f32 %v1334_v7, %v1335_v15 }
 0x241   : > { %v1438_v13 = vsel %vm1277_vm2, %v2159_v4, 0.0  ;;  %v1602_v14 = vmul.f32 %v2159_v4, %v1586_v46  ;;  %v1446_v9 = vrot.slane %v1445_v56, 4  ;;  %v1204_v27 = vmul.f32 %v2427_v35, %v1183_v16  ;;  %v2554_v46 = vpop.trf.xlu0 }
 0x242   : > { %v1439_v25 = vrot.slane %v1438_v13, 4  ;;  %v1625_v59 = vsel %vm1277_vm2, %v1603_v11, 0.0  ;;  %v1088_v29 = vcombine.high %v2499_v52, %v2499_v52  ;;  %v1397_v30 = vsub.f32 %v2495_v6, %v1333_v19 }
 0x243   : > { %v1618_v63 = vsel %vm1277_vm2, %v1602_v14, 0.0  ;;  %v1324_v31 = vmax.f32 %v1322_v5, %v1323_v41  ;;  %v1342_v32 = vrot.slane %v1341_v23, 4  ;;  %v2549_v33 = vrot.slane %v1059_v17, %v2414_v21 }
 0x244   : > { %v1447_v34 = vadd.f32 %v1446_v9, %v1445_v56  ;;  %v1626_v36 = vrot.slane %v1625_v59, 4  ;;  %v2552_v37 = vrot.slane %v1057_v2, %v2414_v21  ;;  %v1440_v38 = vadd.f32 %v1439_v25, %v1438_v13 }
 0x245   : > { %v1619_v43 = vrot.slane %v1618_v63, 4  ;;  %2166 = vpow2.f32 %v1414_v48  ;;  %v1337_v45 = vrot.slane %v1336_v26, 2  ;;  %v1224_v52 = vadd.f32 %v2430_v39, %v1204_v27  ;;  %v2575_v10 = vpop.trf.xlu0 }
 0x246   : > { %v1135_v6 = vrot.slane %v1088_v29, %v2418_v28  ;;  %v1420_v47 = vmul.f32 1.442695, %v1397_v30  ;;  %v1325_v49 = vrot.slane %v1324_v31, 1  ;;  %v1343_v50 = vmax.f32 %v1341_v23, %v1342_v32 }
 0x247   : > { %v2161_v44 = vpop.eup %2160  ;;  %v1147_v53 = vrot.slane %v2549_v33, %v2418_v28  ;;  %v1448_v24 = vrot.slane %v1447_v34, 2  ;;  %v1627_v54 = vadd.f32 %v1626_v36, %v1625_v59  ;;  %v1143_v55 = vrot.slane %v2552_v37, %v2418_v28 }
 0x248   : > { %v1091_v57 = vcombine.high %v2549_v33, %v2549_v33  ;;  %v1452_v18 = vsel %vm1277_vm2, %v2161_v44, 0.0  ;;  %v1441_v40 = vrot.slane %v1440_v38, 2  ;;  %v1620_v61 = vadd.f32 %v1619_v43, %v1618_v63 }
 0x249   : > { %v2560_v21 = vpop.eup %2162  ;;  %v1089_v62 = vcombine.high %v2552_v37, %v2552_v37  ;;  %v1338_v1 = vmax.f32 %v1336_v26, %v1337_v45  ;;  %vm1240_vm13 = vcmp.ge.f32.partialorder %v1224_v52, 0.0  ;;  %v1256_v2 = vmul.f32 0.2, %v1224_v52 }
 0x24a   : > { %v2566_v58 = vpop.eup %2164  ;;  %v1182_v3 = vadd.f32 %v1135_v6, %v963_v51  ;;  %v1459_v4 = vsel %vm1277_vm2, %v2560_v21, 0.0  ;;  %2168 = vpow2.f32 %v1420_v47  ;;  %v1326_v20 = vmax.f32 %v1324_v31, %v1325_v49 }
 0x24b   : > { %v1344_v5 = vrot.slane %v1343_v50, 2  ;;  %v1453_v7 = vrot.slane %v1452_v18, 4  ;;  %v1449_v8 = vadd.f32 %v1448_v24, %v1447_v34  ;;  %v1628_v0 = vrot.slane %v1627_v54, 2  ;;  %v2123_v34 = vpop.f32.mrf.mxu0 }
 0x24c   : > { %v2573_v56 = vsel %vm1240_vm13, %v1224_v52, %v1256_v2  ;;  %v1442_v11 = vadd.f32 %v1441_v40, %v1440_v38  ;;  %v1621_v13 = vrot.slane %v1620_v61, 2  ;;  %v1473_v14 = vsel %vm1277_vm2, %v2566_v58, 0.0  ;;  %v2589_v52 = vpop.trf.xlu0 }
 0x24d   : > { %v1355_v15 = vsel %vm1277_vm2, %v2573_v56, -inf  ;;  %v1339_v16 = vrot.slane %v1338_v1, 1  ;;  %v1203_v19 = vmul.f32 %v2427_v35, %v1182_v3  ;;  %v2583_v41 = vrot.slane %v1091_v57, %v2418_v28  ;;  %v973_v40 = vpop.f32.mrf.mxu0 }
 0x24e   : > { %v1356_v17 = vrot.slane %v1355_v15, 4  ;;  %v1460_v9 = vrot.slane %v1459_v4, 4  ;;  %v1396_v23 = vsub.f32 %v2517_v42, %v1326_v20  ;;  %v1604_v25 = vmul.f32 %v2161_v44, %v1588_v22 }
 0x24f   : > { %v1345_v48 = vmax.f32 %v1343_v50, %v1344_v5  ;;  %v1474_v59 = vrot.slane %v1473_v14, 4  ;;  %v1450_v63 = vrot.slane %v1449_v8, 1  ;;  %v1223_v27 = vadd.f32 %v2430_v39, %v1203_v19 }
 0x250   : > { %v1357_v26 = vmax.f32 %v1355_v15, %v1356_v17  ;;  %v1454_v29 = vadd.f32 %v1453_v7, %v1452_v18  ;;  %v1443_v30 = vrot.slane %v1442_v11, 1  ;;  %v1622_v31 = vadd.f32 %v1621_v13, %v1620_v61 }
 0x251   : > { %v1629_v32 = vadd.f32 %v1628_v0, %v1627_v54  ;;  %v1340_v38 = vmax.f32 %v1338_v1, %v1339_v16  ;;  %vm1239_vm14 = vcmp.ge.f32.partialorder %v1223_v27, 0.0  ;;  %v1255_v45 = vmul.f32 0.2, %v1223_v27  ;;  %v2126_v16 = vpop.f32.mrf.mxu0 }
 0x252   : > { %v2587_v36 = vpop.eup %2166  ;;  %v1358_v43 = vrot.slane %v1357_v26, 2  ;;  %v2591_v42 = vadd.f32 %v1460_v9, %v1459_v4  ;;  %v1418_v22 = vmul.f32 1.442695, %v1396_v23  ;;  %v1346_v44 = vrot.slane %v1345_v48, 1 }
 0x253   : > { %v2594_v6 = vrot.slane %v1089_v62, %v2418_v28  ;;  %v2596_v47 = vadd.f32 %v1474_v59, %v1473_v14  ;;  %v1451_v49 = vadd.f32 %v1450_v63, %v1449_v8  ;;  %v1632_v50 = vsel %vm1277_vm2, %v1604_v25, 0.0 }
 0x254   : > { %v1359_v51 = vmax.f32 %v1357_v26, %v1358_v43  ;;  %v1466_v24 = vsel %vm1277_vm2, %v2587_v36, 0.0  ;;  %v1630_v54 = vrot.slane %v1629_v32, 1  ;;  %v1455_v57 = vrot.slane %v1454_v29, 2 }
 0x255   : > { %v2601_v18 = vsel %vm1239_vm14, %v1223_v27, %v1255_v45  ;;  %v1444_v61 = vadd.f32 %v1443_v30, %v1442_v11  ;;  %v1623_v1 = vrot.slane %v1622_v31, 1  ;;  %v1398_v2 = vsub.f32 %v2527_v60, %v1340_v38  ;;  %v2614_v60 = vpop.trf.xlu0 }
 0x256   : > { %v1348_v62 = vsel %vm1277_vm2, %v2601_v18, -inf  ;;  %2170 = vpow2.f32 %v1418_v22  ;;  %v1347_v3 = vmax.f32 %v1345_v48, %v1346_v44  ;;  %v1360_v4 = vrot.slane %v1359_v51, 1 }
 0x257   : > { %v1349_v20 = vrot.slane %v1348_v62, 4  ;;  %v2606_v5 = vpop.eup %2168  ;;  %v1467_v7 = vrot.slane %v1466_v24, 4  ;;  %2172 = vrcp.f32 %v1451_v49  ;;  %v1185_v8 = vadd.f32 %v2123_v34, %v1147_v53  ;;  %v983_v49 = vpop.f32.mrf.mxu0 }
 0x258   : > { %v1184_v0 = vadd.f32 %v1143_v55, %v973_v40  ;;  %v2616_v11 = vadd.f32 %v1630_v54, %v1629_v32  ;;  %v2618_v13 = vadd.f32 %v1455_v57, %v1454_v29  ;;  %v1633_v14 = vrot.slane %v1632_v50, 4 }
 0x259   : > { %v1350_v15 = vmax.f32 %v1348_v62, %v1349_v20  ;;  %2174 = vrcp.f32 %v1444_v61  ;;  %v1422_v17 = vmul.f32 1.442695, %v1398_v2  ;;  %v1206_v19 = vmul.f32 %v2427_v35, %v1185_v8 }
 0x25a   : > { %v1205_v33 = vmul.f32 %v2427_v35, %v1184_v0  ;;  %v1399_v53 = vsub.f32 %v2537_v12, %v1347_v3  ;;  %v1605_v28 = vmul.f32 %v2560_v21, %v2554_v46  ;;  %v1361_v37 = vmax.f32 %v1359_v51, %v1360_v4  ;;  %v2637_v21 = vpop.trf.xlu0 }
 0x25b   : > { %v1351_v55 = vrot.slane %v1350_v15, 2  ;;  %v2625_v9 = vadd.f32 %v1623_v1, %v1622_v31  ;;  %v1226_v23 = vadd.f32 %v2430_v39, %v1206_v19  ;;  %v1187_v48 = vadd.f32 %v2126_v16, %v2583_v41 }
 0x25c   : > { %v1225_v25 = vadd.f32 %v2430_v39, %v1205_v33  ;;  %v2632_v59 = vsel %vm1277_vm2, %v2606_v5, 0.0  ;;  %v1634_v63 = vadd.f32 %v1633_v14, %v1632_v50  ;;  %v1462_v12 = vrot.slane %v2591_v42, 2 }
 0x25d   : > { %v1352_v26 = vmax.f32 %v1350_v15, %v1351_v55  ;;  %v2635_v27 = vadd.f32 %v1467_v7, %v1466_v24  ;;  %2176 = vpow2.f32 %v1422_v17  ;;  %vm1242_vm15 = vcmp.ge.f32.partialorder %v1226_v23, 0.0 }
 0x25e   : > { %v1258_v46 = vmul.f32 0.2, %v1226_v23  ;;  %v1424_v29 = vmul.f32 1.442695, %v1399_v53  ;;  %v1639_v30 = vsel %vm1277_vm2, %v1605_v28, 0.0  ;;  %v1401_v41 = vsub.f32 %v2573_v56, %v1361_v37  ;;  %v2658_v3 = vpop.trf.xlu0 }
 0x25f   : > { %v1353_v31 = vrot.slane %v1352_v26, 1  ;;  %vm1241_vm1 = vcmp.ge.f32.partialorder %v1225_v25, 0.0  ;;  %v1257_v34 = vmul.f32 0.2, %v1225_v25  ;;  %v1208_v38 = vmul.f32 %v2427_v35, %v1187_v48 }
 0x260   : > { %v2641_v32 = vsel %vm1242_vm15, %v1226_v23, %v1258_v46  ;;  %v1488_v43 = vrot.slane %v2632_v59, 4  ;;  %v1635_v45 = vrot.slane %v1634_v63, 2  ;;  %v1463_v22 = vadd.f32 %v1462_v12, %v2591_v42 }
 0x261   : > { %v1354_v44 = vmax.f32 %v1352_v26, %v1353_v31  ;;  %v1457_v50 = vrot.slane %v2618_v13, 1  ;;  %v1640_v51 = vrot.slane %v1639_v30, 4  ;;  %v1369_v56 = vsel %vm1277_vm2, %v2641_v32, -inf }
 0x262   : > { %v2649_v24 = vsel %vm1241_vm1, %v1225_v25, %v1257_v34  ;;  %2178 = vpow2.f32 %v1424_v29  ;;  %v1370_v57 = vrot.slane %v1369_v56, 4  ;;  %v1428_v42 = vmul.f32 1.442695, %v1401_v41 }
 0x263   : > { %v1400_v54 = vsub.f32 %v2601_v18, %v1354_v44  ;;  %v1362_v40 = vsel %vm1277_vm2, %v2649_v24, -inf  ;;  %v2654_v61 = vpop.eup %2170  ;;  %v1228_v2 = vadd.f32 %v2430_v39, %v1208_v38  ;;  %v1186_v62 = vadd.f32 %v2594_v6, %v983_v49 }
 0x264   : > { %v1363_v1 = vrot.slane %v1362_v40, 4  ;;  %v2173_v4 = vpop.eup %2172  ;;  %v1636_v20 = vadd.f32 %v1635_v45, %v1634_v63  ;;  %v1464_v7 = vrot.slane %v1463_v22, 1  ;;  %v1371_v0 = vmax.f32 %v1369_v56, %v1370_v57 }
 0x265   : > { %v1426_v8 = vmul.f32 1.442695, %v1400_v54  ;;  %vm1244_vm3 = vcmp.ge.f32.partialorder %v1228_v2, 0.0  ;;  %v1260_v14 = vmul.f32 0.2, %v1228_v2  ;;  %v1207_v15 = vmul.f32 %v2427_v35, %v1186_v62 }
 0x266   : > { %v1364_v18 = vmax.f32 %v1362_v40, %v1363_v1  ;;  %v2661_v16 = vpop.eup %2174  ;;  %v1641_v17 = vadd.f32 %v1640_v51, %v1639_v30  ;;  %v1606_v19 = vmul.f32 %v2587_v36, %v2575_v10  ;;  %v1372_v6 = vrot.slane %v1371_v0, 2  ;;  %v2672_v10 = vpop.trf.xlu0 }
 0x267   : > { %2180 = vpow2.f32 %v1426_v8  ;;  %v2665_v53 = vsel %vm1244_vm3, %v1228_v2, %v1260_v14  ;;  %v1227_v28 = vadd.f32 %v2430_v39, %v1207_v15  ;;  %v1458_v37 = vadd.f32 %v1457_v50, %v2618_v13 }
 0x268   : > { %2182 = vpow2.f32 %v1428_v42  ;;  %v1365_v33 = vrot.slane %v1364_v18, 2  ;;  %v1469_v55 = vrot.slane %v2635_v27, 2  ;;  %v1373_v23 = vmax.f32 %v1371_v0, %v1372_v6 }
 0x269   : > { %v1383_v35 = vsel %vm1277_vm2, %v2665_v53, -inf  ;;  %vm1243_vm4 = vcmp.ge.f32.partialorder %v1227_v28, 0.0  ;;  %v1259_v63 = vmul.f32 0.2, %v1227_v28  ;;  %v1637_v12 = vrot.slane %v1636_v20, 1 }
 0x26a   : > { %v1366_v25 = vmax.f32 %v1364_v18, %v1365_v33  ;;  %v1384_v48 = vrot.slane %v1383_v35, 4  ;;  %v2177_v36 = vpop.eup %2176  ;;  %v1465_v26 = vadd.f32 %v1464_v7, %v1463_v22  ;;  %v1642_v46 = vrot.slane %v1641_v17, 2  ;;  %v2687_v1 = vpop.trf.xlu0 }
 0x26b   : > { %v1374_v29 = vrot.slane %v1373_v23, 1  ;;  %v1646_v39 = vsel %vm1277_vm2, %v1606_v19, 0.0  ;;  %v2675_v41 = vsel %vm1243_vm4, %v1227_v28, %v1259_v63  ;;  %2184 = vrcp.f32 %v1458_v37 }
 0x26c   : > { %v1367_v13 = vrot.slane %v1366_v25, 1  ;;  %v1385_v30 = vmax.f32 %v1383_v35, %v1384_v48  ;;  %v1470_v31 = vadd.f32 %v1469_v55, %v2635_v27  ;;  %v1376_v38 = vsel %vm1277_vm2, %v2675_v41, -inf }
 0x26d   : > { %v1375_v34 = vmax.f32 %v1373_v23, %v1374_v29  ;;  %v1494_v45 = vsel %vm1277_vm2, %v2177_v36, 0.0  ;;  %v1377_v22 = vrot.slane %v1376_v38, 4  ;;  %v2681_v50 = vadd.f32 %v1637_v12, %v1636_v20 }
 0x26e   : > { %v1368_v44 = vmax.f32 %v1366_v25, %v1367_v13  ;;  %v1386_v49 = vrot.slane %v1385_v30, 2  ;;  %2186 = vrcp.f32 %v1465_v26  ;;  %v1647_v51 = vrot.slane %v1646_v39, 4  ;;  %v2702_v63 = vpop.trf.xlu0 }
 0x26f   : > { %v1403_v56 = vsub.f32 %v2641_v32, %v1375_v34  ;;  %v2684_v54 = vpop.eup %2178  ;;  %v1643_v57 = vadd.f32 %v1642_v46, %v1641_v17  ;;  %v1378_v42 = vmax.f32 %v1376_v38, %v1377_v22  ;;  %v1480_v2 = vsel %vm1277_vm2, %v2654_v61, 0.0 }
 0x270   : > { %v1402_v27 = vsub.f32 %v2649_v24, %v1368_v44  ;;  %v1387_v40 = vmax.f32 %v1385_v30, %v1386_v49  ;;  %v1495_v62 = vrot.slane %v1494_v45, 4  ;;  %v1471_v7 = vrot.slane %v1470_v31, 1 }
 0x271   : > { %v1432_v20 = vmul.f32 1.442695, %v1403_v56  ;;  %v1731_v8 = vmul.f32 %v2173_v4, %v2616_v11  ;;  %v1379_v32 = vrot.slane %v1378_v42, 2  ;;  %vm1762_vm5 = vcmask 1041409  }
 0x272   : > { %v1430_v0 = vmul.f32 1.442695, %v1402_v27  ;;  %v1388_v18 = vrot.slane %v1387_v40, 1  ;;  %v1501_v14 = vsel %vm1277_vm2, %v2684_v54, 0.0  ;;  %v1648_v24 = vadd.f32 %v1647_v51, %v1646_v39 }
 0x273   : > { %2188 = vpow2.f32 %v1432_v20  ;;  %v1476_v15 = vrot.slane %v2596_v47, 2  ;;  %v1607_v19 = vmul.f32 %v2566_v58, %v2589_v52  ;;  %v1380_v33 = vmax.f32 %v1378_v42, %v1379_v32 }
 0x274   : > { %v2181_v17 = vpop.eup %2180  ;;  %2190 = vpow2.f32 %v1430_v0  ;;  %v1389_v6 = vmax.f32 %v1387_v40, %v1388_v18  ;;  %v1481_v11 = vrot.slane %v1480_v2, 4  ;;  %v1496_v4 = vadd.f32 %v1495_v62, %v1494_v45 }
 0x275   : > { %v2697_v28 = vpop.eup %2182  ;;  %v1644_v37 = vrot.slane %v1643_v57, 1  ;;  %v1508_v55 = vsel %vm1277_vm2, %v2181_v17, 0.0  ;;  %v1502_v23 = vrot.slane %v1501_v14, 4  ;;  %v1381_v25 = vrot.slane %v1380_v33, 1 }
 0x276   : > { %v1405_v35 = vsub.f32 %v2665_v53, %v1389_v6  ;;  %v1610_v48 = vmul.f32 %v2177_v36, %v2658_v3  ;;  %v1730_v58 = vmul.f32 %v2661_v16, %v2625_v9  ;;  %v1509_v52 = vrot.slane %v1508_v55, 4 }
 0x277   : > { %v1472_v12 = vadd.f32 %v1471_v7, %v1470_v31  ;;  %v1649_v26 = vrot.slane %v1648_v24, 2  ;;  %v1515_v46 = vsel %vm1277_vm2, %v2697_v28, 0.0  ;;  %v1477_v29 = vadd.f32 %v1476_v15, %v2596_v47 }
 0x278   : > { %v1653_v39 = vsel %vm1277_vm2, %v1607_v19, 0.0  ;;  %v1382_v13 = vmax.f32 %v1380_v33, %v1381_v25  ;;  %v2710_v53 = vadd.f32 %v1481_v11, %v1480_v2  ;;  %v1436_v30 = vmul.f32 1.442695, %v1405_v35  ;;  %v2185_v34 = vpop.eup %2184 }
 0x279   : > { %v1608_v3 = vmul.f32 %v2654_v61, %v2614_v60  ;;  %v1497_v36 = vrot.slane %v1496_v4, 2  ;;  %v1503_v9 = vadd.f32 %v1502_v23, %v1501_v14  ;;  %v2714_v16 = vadd.f32 %v1644_v37, %v1643_v57  ;;  %v1598_v61 = vpop.trf.xlu0 }
 0x27a   : > { %v1404_v31 = vsub.f32 %v2675_v41, %v1382_v13  ;;  %v1674_v38 = vsel %vm1277_vm2, %v1610_v48, 0.0  ;;  %v1516_v45 = vrot.slane %v1515_v46, 4  ;;  %v1510_v47 = vadd.f32 %v1509_v52, %v1508_v55 }
 0x27b   : > { %2192 = vrcp.f32 %v1472_v12  ;;  %v1654_v44 = vrot.slane %v1653_v39, 4  ;;  %v2718_v49 = vpop.eup %2186  ;;  %v1650_v22 = vadd.f32 %v1649_v26, %v1648_v24  ;;  %v1478_v51 = vrot.slane %v1477_v29, 1 }
 0x27c   : > { %v1434_v56 = vmul.f32 1.442695, %v1404_v31  ;;  %v1609_v60 = vmul.f32 %v2606_v5, %v2637_v21  ;;  %2194 = vpow2.f32 %v1436_v30  ;;  %v1660_v57 = vsel %vm1277_vm2, %v1608_v3, 0.0 }
 0x27d   : > { %v1498_v27 = vadd.f32 %v1497_v36, %v1496_v4  ;;  %v1675_v41 = vrot.slane %v1674_v38, 4  ;;  %v2724_v40 = vsel %vm1762_vm5, %v1731_v8, %v1730_v58  ;;  %v1504_v42 = vrot.slane %v1503_v9, 2  ;;  %v1599_v11 = vpop.trf.xlu0 }
 0x27e   : > { %2196 = vpow2.f32 %v1434_v56  ;;  %v1611_v2 = vmul.f32 %v2684_v54, %v2672_v10  ;;  %v2729_v62 = vmul.f32 %v2185_v34, %v2681_v50  ;;  %v1517_v7 = vadd.f32 %v1516_v45, %v1515_v46 }
 0x27f   : > { %v1511_v20 = vrot.slane %v1510_v47, 2  ;;  %v1612_v5 = vmul.f32 %v2181_v17, %v2687_v1  ;;  %v1651_v0 = vrot.slane %v1650_v22, 1  ;;  %v1479_v18 = vadd.f32 %v1478_v51, %v1477_v29 }
 0x280   : > { %v2189_v21 = vpop.eup %2188  ;;  %v1655_v32 = vadd.f32 %v1654_v44, %v1653_v39  ;;  %v1661_v14 = vrot.slane %v1660_v57, 4  ;;  %v1667_v15 = vsel %vm1277_vm2, %v1609_v60, 0.0  ;;  %v1499_v19 = vrot.slane %v1498_v27, 1 }
 0x281   : > { %v2191_v24 = vpop.eup %2190  ;;  %v1529_v8 = vsel %vm1277_vm2, %v2189_v21, 0.0  ;;  %v1676_v6 = vadd.f32 %v1675_v41, %v1674_v38  ;;  %v1505_v54 = vadd.f32 %v1504_v42, %v1503_v9  ;;  %v1681_v33 = vsel %vm1277_vm2, %v1611_v2, 0.0  ;;  %v1600_v38 = vpop.trf.xlu0 }
 0x282   : > { %v1530_v10 = vrot.slane %v1529_v8, 4  ;;  %v1522_v50 = vsel %vm1277_vm2, %v2191_v24, 0.0  ;;  %v1512_v17 = vadd.f32 %v1511_v20, %v1510_v47  ;;  %v1688_v4 = vsel %vm1277_vm2, %v1612_v5, 0.0 }
 0x283   : > { %v1523_v1 = vrot.slane %v1522_v50, 4  ;;  %v1518_v37 = vrot.slane %v1517_v7, 2  ;;  %v2737_v55 = vadd.f32 %v1651_v0, %v1650_v22  ;;  %2198 = vrcp.f32 %v1479_v18 }
 0x284   : > { %v1656_v23 = vrot.slane %v1655_v32, 2  ;;  %v2739_v35 = vadd.f32 %v1661_v14, %v1660_v57  ;;  %v1668_v48 = vrot.slane %v1667_v15, 4  ;;  %v1500_v58 = vadd.f32 %v1499_v19, %v1498_v27 }
 0x285   : > { %v1524_v25 = vadd.f32 %v1523_v1, %v1522_v50  ;;  %v1682_v52 = vrot.slane %v1681_v33, 4  ;;  %v1531_v12 = vadd.f32 %v1530_v10, %v1529_v8  ;;  %v1677_v26 = vrot.slane %v1676_v6, 2  ;;  %v1601_v19 = vpop.trf.xlu0 }
 0x286   : > { %v1506_v46 = vrot.slane %v1505_v54, 1  ;;  %v1689_v29 = vrot.slane %v1688_v4, 4  ;;  %v1513_v39 = vrot.slane %v1512_v17, 1  ;;  %v1519_v13 = vadd.f32 %v1518_v37, %v1517_v7 }
 0x287   : > { %v1613_v30 = vmul.f32 %v2697_v28, %v2702_v63  ;;  %v1525_v3 = vrot.slane %v1524_v25, 2  ;;  %v2745_v34 = vadd.f32 %v1656_v23, %v1655_v32  ;;  %v1663_v9 = vrot.slane %v2739_v35, 2 }
 0x288   : > { %v2743_v36 = vpop.eup %2192  ;;  %v1614_v31 = vmul.f32 %v2191_v24, %v1598_v61  ;;  %v1483_v45 = vrot.slane %v2710_v53, 2  ;;  %v2749_v47 = vadd.f32 %v1668_v48, %v1667_v15  ;;  %2200 = vrcp.f32 %v1500_v58 }
 0x289   : > { %v1683_v44 = vadd.f32 %v1682_v52, %v1681_v33  ;;  %v1526_v22 = vadd.f32 %v1525_v3, %v1524_v25  ;;  %v2195_v51 = vpop.eup %2194  ;;  %v2751_v56 = vadd.f32 %v1677_v26, %v1676_v6  ;;  %v1507_v28 = vadd.f32 %v1506_v46, %v1505_v54 }
 0x28a   : > { %v1690_v63 = vadd.f32 %v1689_v29, %v1688_v4  ;;  %v1532_v60 = vrot.slane %v1531_v12, 2  ;;  %v1514_v27 = vadd.f32 %v1513_v39, %v1512_v17  ;;  %v1520_v41 = vrot.slane %v1519_v13, 1 }
 0x28b   : > { %v2197_v57 = vpop.eup %2196  ;;  %v1695_v42 = vsel %vm1277_vm2, %v1613_v30, 0.0  ;;  %v1615_v61 = vmul.f32 %v2189_v21, %v1599_v11  ;;  %v1702_v7 = vsel %vm1277_vm2, %v1614_v31, 0.0  ;;  %v1484_v5 = vadd.f32 %v1483_v45, %v2710_v53 }
 0x28c   : > { %v1536_v2 = vsel %vm1277_vm2, %v2197_v57, 0.0  ;;  %v1616_v20 = vmul.f32 %v2197_v57, %v1600_v38  ;;  %v1543_v0 = vsel %vm1277_vm2, %v2195_v51, 0.0  ;;  %v1684_v32 = vrot.slane %v1683_v44, 2 }
 0x28d   : > { %v1537_v18 = vrot.slane %v1536_v2, 4  ;;  %v1527_v14 = vrot.slane %v1526_v22, 1  ;;  %2202 = vrcp.f32 %v1507_v28  ;;  %v1691_v24 = vrot.slane %v1690_v63, 2 }
 0x28e   : > { %v1696_v8 = vrot.slane %v1695_v42, 4  ;;  %v1533_v15 = vadd.f32 %v1532_v60, %v1531_v12  ;;  %v1521_v10 = vadd.f32 %v1520_v41, %v1519_v13  ;;  %v1703_v21 = vrot.slane %v1702_v7, 4 }
 0x28f   : > { %v1538_v6 = vadd.f32 %v1537_v18, %v1536_v2  ;;  %v1709_v50 = vsel %vm1277_vm2, %v1615_v61, 0.0  ;;  %v1544_v54 = vrot.slane %v1543_v0, 4  ;;  %2204 = vrcp.f32 %v1514_v27 }
 0x290   : > { %v1716_v33 = vsel %vm1277_vm2, %v1616_v20, 0.0  ;;  %v1485_v53 = vrot.slane %v1484_v5, 1  ;;  %v2760_v11 = vpop.eup %2198  ;;  %v1528_v1 = vadd.f32 %v1527_v14, %v1526_v22  ;;  %v1617_v4 = vmul.f32 %v2195_v51, %v1601_v19 }
 0x291   : > { %v1539_v17 = vrot.slane %v1538_v6, 2  ;;  %v1489_v37 = vadd.f32 %v1488_v43, %v2632_v59  ;;  %v1697_v23 = vadd.f32 %v1696_v8, %v1695_v42  ;;  %v1534_v25 = vrot.slane %v1533_v15, 1 }
 0x292   : > { %v1710_v48 = vrot.slane %v1709_v50, 4  ;;  %v1486_v58 = vadd.f32 %v1485_v53, %v1484_v5  ;;  %v1704_v52 = vadd.f32 %v1703_v21, %v1702_v7  ;;  %v1717_v26 = vrot.slane %v1716_v33, 4 }
 0x293   : > { %v1540_v12 = vadd.f32 %v1539_v17, %v1538_v6  ;;  %v1490_v46 = vrot.slane %v1489_v37, 2  ;;  %v1545_v29 = vadd.f32 %v1544_v54, %v1543_v0  ;;  %v1685_v39 = vadd.f32 %v1684_v32, %v1683_v44 }
 0x294   : > { %v1692_v13 = vadd.f32 %v1691_v24, %v1690_v63  ;;  %2206 = vrcp.f32 %v1486_v58  ;;  %vm1764_vm6 = vcmask 1042434   ;;  %v1723_v3 = vsel %vm1277_vm2, %v1617_v4, 0.0 }
 0x295   : > { %2208 = vrcp.f32 %v1528_v1  ;;  %v1541_v30 = vrot.slane %v1540_v12, 1  ;;  %v1491_v31 = vadd.f32 %v1490_v46, %v1489_v37  ;;  %v2201_v38 = vpop.eup %2200  ;;  %v1698_v59 = vrot.slane %v1697_v23, 2 }
 0x296   : > { %2210 = vrcp.f32 %v1521_v10  ;;  %v1535_v43 = vadd.f32 %v1534_v25, %v1533_v15  ;;  %v1711_v45 = vadd.f32 %v1710_v48, %v1709_v50  ;;  %v1705_v22 = vrot.slane %v1704_v52, 2 }
 0x297   : > { %v1542_v51 = vadd.f32 %v1541_v30, %v1540_v12  ;;  %v1718_v28 = vadd.f32 %v1717_v26, %v1716_v33  ;;  %v1492_v60 = vrot.slane %v1491_v31, 1  ;;  %v1664_v44 = vadd.f32 %v1663_v9, %v2739_v35 }
 0x298   : > { %v1679_v63 = vrot.slane %v2751_v56, 1  ;;  %v1724_v57 = vrot.slane %v1723_v3, 4  ;;  %v1546_v27 = vrot.slane %v1545_v29, 2  ;;  %v1670_v41 = vrot.slane %v2749_v47, 2 }
 0x299   : > { %v1686_v42 = vrot.slane %v1685_v39, 1  ;;  %2212 = vrcp.f32 %v1542_v51  ;;  %v1493_v61 = vadd.f32 %v1492_v60, %v1491_v31  ;;  %v1693_v2 = vrot.slane %v1692_v13, 1 }
 0x29a   : > { %v1699_v7 = vadd.f32 %v1698_v59, %v1697_v23  ;;  %2214 = vrcp.f32 %v1535_v43  ;;  %v1547_v20 = vadd.f32 %v1546_v27, %v1545_v29  ;;  %v2203_v5 = vpop.eup %2202  ;;  %v1706_v0 = vadd.f32 %v1705_v22, %v1704_v52 }
 0x29b   : > { %v1712_v18 = vrot.slane %v1711_v45, 2  ;;  %v1719_v32 = vrot.slane %v1718_v28, 2  ;;  %2216 = vrcp.f32 %v1493_v61  ;;  %v1734_v35 = vmul.f32 %v2743_v36, %v2737_v55 }
 0x29c   : > { %v1680_v9 = vadd.f32 %v1679_v63, %v2751_v56  ;;  %v1725_v14 = vadd.f32 %v1724_v57, %v1723_v3  ;;  %v1548_v24 = vrot.slane %v1547_v20, 1  ;;  %v2205_v8 = vpop.eup %2204  ;;  %v1658_v15 = vrot.slane %v2745_v34, 1 }
 0x29d   : > { %v1665_v19 = vrot.slane %v1664_v44, 1  ;;  %v1671_v6 = vadd.f32 %v1670_v41, %v2749_v47  ;;  %v1687_v10 = vadd.f32 %v1686_v42, %v1685_v39  ;;  %v1694_v50 = vadd.f32 %v1693_v2, %v1692_v13 }
 0x29e   : > { %v1738_v21 = vmul.f32 %v2201_v38, %v1680_v9  ;;  %v1700_v54 = vrot.slane %v1699_v7, 1  ;;  %v1549_v33 = vadd.f32 %v1548_v24, %v1547_v20  ;;  %v1707_v1 = vrot.slane %v1706_v0, 1 }
 0x29f   : > { %v1739_v53 = vmul.f32 %v2203_v5, %v1687_v10  ;;  %v1713_v17 = vadd.f32 %v1712_v18, %v1711_v45  ;;  %v1720_v4 = vadd.f32 %v1719_v32, %v1718_v28  ;;  %v1726_v55 = vrot.slane %v1725_v14, 2 }
 0x2a0   : > { %v1765_v36 = vsel %vm1764_vm6, %v2729_v62, %v2724_v40  ;;  %vm1766_vm2 = vcmask 1043459   ;;  %2218 = vrcp.f32 %v1549_v33  ;;  %v1733_v47 = vmul.f32 %v2718_v49, %v2714_v16 }
 0x2a1   : > { %v2207_v56 = vpop.eup %2206  ;;  %v1659_v37 = vadd.f32 %v1658_v15, %v2745_v34  ;;  %v1740_v23 = vmul.f32 %v2205_v8, %v1694_v50  ;;  %vm1768_vm7 = vcmask 1044484   ;;  %v1666_v48 = vadd.f32 %v1665_v19, %v1664_v44 }
 0x2a2   : > { %v2209_v25 = vpop.eup %2208  ;;  %v1672_v58 = vrot.slane %v1671_v6, 1  ;;  %v1776_v52 = vsel %vm1762_vm5, %v1739_v53, %v1738_v21  ;;  %v1701_v12 = vadd.f32 %v1700_v54, %v1699_v7  ;;  %v1708_v46 = vadd.f32 %v1707_v1, %v1706_v0 }
 0x2a3   : > { %v2211_v26 = vpop.eup %2210  ;;  %v1714_v29 = vrot.slane %v1713_v17, 1  ;;  %v1721_v40 = vrot.slane %v1720_v4, 1  ;;  %v1767_v62 = vsel %vm1766_vm2, %v1733_v47, %v1765_v36  ;;  %v1727_v39 = vadd.f32 %v1726_v55, %v1725_v14 }
 0x2a4   : > { %v1736_v13 = vmul.f32 %v2207_v56, %v1666_v48  ;;  %v1769_v16 = vsel %vm1768_vm7, %v1734_v35, %v1767_v62  ;;  %vm1770_vm8 = vcmask 1045509   ;;  %v1735_v49 = vmul.f32 %v2760_v11, %v1659_v37 }
 0x2a5   : > { %v1777_v34 = vsel %vm1764_vm6, %v1740_v23, %v1776_v52  ;;  %v1742_v30 = vmul.f32 %v2209_v25, %v1708_v46  ;;  %vm1772_vm9 = vcmask 1046534   ;;  %v1741_v31 = vmul.f32 %v2211_v26, %v1701_v12 }
 0x2a6   : > { %v2213_v3 = vpop.eup %2212  ;;  %v1673_v59 = vadd.f32 %v1672_v58, %v1671_v6  ;;  %v1715_v43 = vadd.f32 %v1714_v29, %v1713_v17  ;;  %v1722_v45 = vadd.f32 %v1721_v40, %v1720_v4  ;;  %v1771_v22 = vsel %vm1770_vm8, %v1735_v49, %v1769_v16 }
 0x2a7   : > { %v2215_v38 = vpop.eup %2214  ;;  %v1728_v28 = vrot.slane %v1727_v39, 1  ;;  %v1773_v60 = vsel %vm1772_vm9, %v1736_v13, %v1771_v22  ;;  %vm1774_vm10 = vcmask 1047559   ;;  %v1778_v11 = vsel %vm1766_vm2, %v1741_v31, %v1777_v34 }
 0x2a8   : > { %v2217_v51 = vpop.eup %2216  ;;  %v1744_v44 = vmul.f32 %v2213_v3, %v1722_v45  ;;  %v1779_v57 = vsel %vm1768_vm7, %v1742_v30, %v1778_v11  ;;  %v1743_v27 = vmul.f32 %v2215_v38, %v1715_v43 }
 0x2a9   : > { %v1737_v63 = vmul.f32 %v2217_v51, %v1673_v59  ;;  %v1729_v42 = vadd.f32 %v1728_v28, %v1727_v39 }
 0x2aa   : > { %v1780_v61 = vsel %vm1770_vm8, %v1743_v27, %v1779_v57 }
 0x2ab   : > { %v1775_v41 = vsel %vm1774_vm10, %v1737_v63, %v1773_v60  ;;  %v1781_v7 = vsel %vm1772_vm9, %v1744_v44, %v1780_v61 }
 0x2ac   : > { %1785 = vxpose.xlu1.b32.start [1/2] (short) (narrow) %v1775_v41, 32 }
 0x2ad   : > { %v2219_v2 = vpop.eup %2218 }
 0x2ae   : > { %v1745_v20 = vmul.f32 %v2219_v2, %v1729_v42 }
 0x2b0   : > { %v1782_v5 = vsel %vm1774_vm10, %v1745_v20, %v1781_v7 }
 0x2b1   : > { %1786 = vxpose.xlu1.b32.end [2/2] (short) (narrow) %v1782_v5, 32 }
 0x329   : > { %v1801_v0 = vpop.trf.xlu1 }
 0x32a   : > { %1817 = vst.msk [vmem:[%s401_s13] sm:$0xff] %vm406_vm0, %v1801_v0 }
 0x32d   : > { %v1802_v18 = vpop.trf.xlu1 }
 0x32e   : > { %1818 = vst.msk [vmem:[%s401_s13 + $0x8] sm:$0xff] %vm406_vm0, %v1802_v18 }
 0x331   : > { %v1803_v32 = vpop.trf.xlu1 }
 0x332   : > { %1819 = vst.msk [vmem:[%s401_s13 + $0x10] sm:$0xff] %vm406_vm0, %v1803_v32 }
 0x335   : > { %v1804_v35 = vpop.trf.xlu1 }
 0x336   : > { %1820 = vst.msk [vmem:[%s401_s13 + $0x18] sm:$0xff] %vm406_vm0, %v1804_v35 }
 0x337 PF: > { %s17_s26 = sadd.s32 1, %s2242_s26   ;;  %s2819_s24 = smov %s2238_s25 }
 0x338   : > { %p14_p5 = scmp.ge.s32.totalorder %s17_s26, 4   ;;  %s2820_s25 = smov %s2822_s27 }
 0x33a   :  { %16 = sbr.rel (!%p14_p5) target bundleno = 2 (0x2), region = 87 }

</bundles_post_ra>
